<compile_context>
chip_gen: v7x
topology: tpu7x:2x2x1
jax: 0.10.0
libtpu: 0.0.40
codegen_flags: <defaults>
</compile_context>

<pallas_src>
import functools

import jax
import jax.numpy as jnp
from jax.experimental import pallas as pl
from jax.experimental.pallas import tpu as pltpu


def _pick_vmem_limit():
    """Generation-aware scoped-VMEM limit: ~3/4 of physical, capped at 100 MiB
    (=> ~48 MiB on v7x's 64 MiB, ~96 MiB on v5e/v6e's 128 MiB)."""
    cap = None
    try:
        cap = getattr(pltpu.get_tpu_info(), "vmem_capacity_bytes", None)
    except Exception:
        cap = None
    if not cap:
        return 48 * 1024 * 1024
    return int(min(100 * 1024 * 1024, max(32 * 1024 * 1024, cap * 3 // 4)))


def _double_conv_kernel(x_ref, w1_ref, b1_ref, w2_ref, b2_ref, o_ref, *,
                        K, W, W2, H2, rows1, rows2, cin, c1, fuse1, fuse2):
    """One grid step == one batch image (stride 1, VALID conv only).

    x_ref : (1, H*W + 2*(K-1), Cin)  bf16  flattened, zero-row-padded NHWC image
    w1_ref: (K*K*Cin, C1)            bf16  conv1 weights, taps fused on rows
    b1_ref: (1, C1)                  f32
    w2_ref: (K*K*C1, C2p)            bf16  conv2 weights, Cout padded to 128*k
    b2_ref: (1, C2p)                 f32
    o_ref : (1, H2, W2, C2p)         bf16  valid conv2 output, lane-dense Cout
    """
    x = x_ref[0]                                    # (HWp, Cin) bf16 — no upcast
    taps = [(kh, kw) for kh in range(K) for kw in range(K)]

    # ---- conv1 + ReLU ----------------------------------------------------
    if fuse1:
        # Fused-tap im2col: one matmul with K-dim = K*K*Cin (bf16 slices only).
        patch = jnp.concatenate(
            [x[kh * W + kw: kh * W + kw + rows1, :] for kh, kw in taps], axis=1)
        h = jnp.dot(patch, w1_ref[...], preferred_element_type=jnp.float32)
    else:
        # Per-tap accumulation: no K*K-duplicated patch at real channel counts.
        h = jnp.zeros((rows1, c1), jnp.float32)
        for t, (kh, kw) in enumerate(taps):
            off = kh * W + kw
            h = h + jnp.dot(x[off:off + rows1, :],
                            w1_ref[t * cin:(t + 1) * cin, :],
                            preferred_element_type=jnp.float32)
    h = jnp.maximum(h + b1_ref[...], 0.0)           # f32 bias + ReLU
    hb = h.astype(jnp.bfloat16)                     # single (rows1, C1) cast

    # ---- conv2 + ReLU on the VMEM-resident intermediate -------------------
    if fuse2:
        patch = jnp.concatenate(
            [hb[kh * W + kw: kh * W + kw + rows2, :] for kh, kw in taps], axis=1)
        acc = jnp.dot(patch, w2_ref[...], preferred_element_type=jnp.float32)
    else:
        acc = jnp.zeros((rows2, w2_ref.shape[1]), jnp.float32)
        for t, (kh, kw) in enumerate(taps):
            off = kh * W + kw
            acc = acc + jnp.dot(hb[off:off + rows2, :],
                                w2_ref[t * c1:(t + 1) * c1, :],
                                preferred_element_type=jnp.float32)
    acc = jnp.maximum(acc + b2_ref[...], 0.0)

    # Drop the full-width garbage columns in-kernel; lane-dense bf16 store.
    y = acc.astype(jnp.bfloat16).reshape(H2, W, acc.shape[-1])[:, :W2, :]
    o_ref[0] = y


def double_conv_forward_nhwc(x_nhwc, params):
    """Core fused DoubleConv (NHWC in, NHWC bf16 out, valid conv, stride 1)."""
    (w1, b1), (w2, b2) = params                     # weights in HWIO layout
    N, H, W, Cin = x_nhwc.shape
    K = w1.shape[0]
    C1 = w1.shape[3]
    C2 = w2.shape[3]

    H1, W1 = H - K + 1, W - K + 1                   # after conv1
    H2, W2 = H1 - K + 1, W1 - K + 1                 # after conv2
    C2p = -(-C2 // 128) * 128                       # lane-dense padded Cout

    HWp = H * W + 2 * (K - 1)                       # flat rows incl. zero pad
    rows1 = H1 * W + (K - 1)                        # full-width conv1 rows
    rows2 = H2 * W                                  # full-width conv2 rows

    # Flat-row indexing invariants (stride 1, VALID only). Valid output
    # columns (w < W2) never read the zero-pad rows or garbage columns.
    assert rows1 - 1 + (K - 1) * W + (K - 1) == HWp - 1, "conv1 tap out of range"
    assert rows2 - 1 + (K - 1) * W + (K - 1) == rows1 - 1, "conv2 tap out of range"

    # Flatten (H, W) row-major, zero-pad trailing halo rows, bf16.
    x_flat = x_nhwc.reshape(N, H * W, Cin)
    x_flat = jnp.pad(x_flat, ((0, 0), (0, 2 * (K - 1)), (0, 0)))
    x_flat = x_flat.astype(jnp.bfloat16)

    # Fuse the KxK taps onto the contraction rows; pad conv2 Cout to 128*k.
    w1f = w1.reshape(K * K * Cin, C1).astype(jnp.bfloat16)
    b1f = b1.reshape(1, C1).astype(jnp.float32)
    w2f = jnp.pad(w2.reshape(K * K * C1, C2),
                  ((0, 0), (0, C2p - C2))).astype(jnp.bfloat16)
    b2f = jnp.pad(b2.reshape(1, C2), ((0, 0), (0, C2p - C2))).astype(jnp.float32)

    # im2col-concat only while the fused K-dim is small; per-tap accumulation
    # at real UNet channel counts (avoids 9x patch duplication / relayout).
    fuse1 = (K * K * Cin) <= 512
    fuse2 = (K * K * C1) <= 512

    kernel = functools.partial(
        _double_conv_kernel, K=K, W=W, W2=W2, H2=H2,
        rows1=rows1, rows2=rows2, cin=Cin, c1=C1, fuse1=fuse1, fuse2=fuse2)

    # Real (unpadded) FLOPs / bytes as a scheduler hint.
    flops = 2 * N * (H1 * W1 * K * K * Cin * C1 + H2 * W2 * K * K * C1 * C2)
    bytes_accessed = (x_flat.size * 2 + w1f.size * 2 + w2f.size * 2
                      + b1f.size * 4 + b2f.size * 4 + N * H2 * W2 * C2p * 2)

    out = pl.pallas_call(
        kernel,
        out_shape=jax.ShapeDtypeStruct((N, H2, W2, C2p), jnp.bfloat16),
        grid=(N,),
        in_specs=[
            pl.BlockSpec((1, HWp, Cin), lambda n: (n, 0, 0)),
            pl.BlockSpec((K * K * Cin, C1), lambda n: (0, 0)),
            pl.BlockSpec((1, C1), lambda n: (0, 0)),
            pl.BlockSpec((K * K * C1, C2p), lambda n: (0, 0)),
            pl.BlockSpec((1, C2p), lambda n: (0, 0)),
        ],
        out_specs=pl.BlockSpec((1, H2, W2, C2p), lambda n: (n, 0, 0, 0)),
        compiler_params=pltpu.CompilerParams(
            dimension_semantics=("parallel",),
            vmem_limit_bytes=_pick_vmem_limit(),
        ),
        cost_estimate=pl.CostEstimate(flops=int(flops), transcendentals=0,
                                      bytes_accessed=int(bytes_accessed)),
    )(x_flat, w1f, b1f, w2f, b2f)

    return out[..., :C2]                            # drop channel padding (NHWC bf16)


def double_conv_forward(x_nchw, params):
    """PyTorch-parity entry point: NCHW f32 in -> NCHW f32 out."""
    x_nhwc = jnp.transpose(x_nchw, (0, 2, 3, 1))
    y = double_conv_forward_nhwc(x_nhwc, params)
    return jnp.transpose(y, (0, 3, 1, 2)).astype(jnp.float32)


def init_double_conv_params(key, in_channels, out_channels, kernel_size):
    """Deterministic init; PyTorch weight shape (Cout,Cin,KH,KW) -> HWIO."""
    k1, k2, k3, k4 = jax.random.split(key, 4)

    def make(kw_key, kb_key, cin, cout):
        fan_in = cin * kernel_size * kernel_size
        bound = 1.0 / jnp.sqrt(fan_in)
        w_oihw = jax.random.uniform(
            kw_key, (cout, cin, kernel_size, kernel_size),
            minval=-bound, maxval=bound, dtype=jnp.float32)
        b = jax.random.uniform(kb_key, (cout,),
                               minval=-bound, maxval=bound, dtype=jnp.float32)
        w_hwio = jnp.transpose(w_oihw, (2, 3, 1, 0))   # (KH,KW,Cin,Cout)
        return w_hwio, b

    return (make(k1, k2, in_channels, out_channels),
            make(k3, k4, out_channels, out_channels))


if __name__ == "__main__":
    key = jax.random.PRNGKey(0)
    k_x, k_p = jax.random.split(key)

    N, Cin, H, W = 2, 4, 16, 16
    Cout, ksize = 8, 3

    x = jax.random.normal(k_x, (N, Cin, H, W), dtype=jnp.float32)
    params = init_double_conv_params(k_p, Cin, Cout, ksize)

    fwd = jax.jit(double_conv_forward)
    out = jax.block_until_ready(fwd(x, params))

    # Reference with the SAME numerics (bf16 products, f32 accum/epilogue;
    # kernel additionally rounds the final activation to bf16).
    (w1, b1), (w2, b2) = params

    def ref_conv_relu(xr, w_hwio, b):
        w_oihw = jnp.transpose(w_hwio, (3, 2, 0, 1)).astype(jnp.bfloat16)
        y = jax.lax.conv_general_dilated(
            xr.astype(jnp.bfloat16), w_oihw, window_strides=(1, 1),
            padding="VALID", dimension_numbers=("NCHW", "OIHW", "NCHW"),
            preferred_element_type=jnp.float32)
        return jnp.maximum(y + b.reshape(1, -1, 1, 1), 0.0)

    ref = ref_conv_relu(ref_conv_relu(x, w1, b1), w2, b2)

    assert out.shape == (N, Cout, H - 2 * (ksize - 1), W - 2 * (ksize - 1)), out.shape
    assert bool(jnp.allclose(out, ref, atol=2e-2, rtol=2e-2)), \
        float(jnp.max(jnp.abs(out - ref)))
    print("KERNEL_OK")
</pallas_src>

<mosaic_0001>
module attributes {stable_mosaic.version = 11 : i64} {
  func.func @_double_conv_kernel(%arg0: i32, %arg1: memref<1x260x4xbf16, #tpu.memory_space<vmem>>, %arg2: memref<36x8xbf16, #tpu.memory_space<vmem>>, %arg3: memref<1x8xf32, #tpu.memory_space<vmem>>, %arg4: memref<72x128xbf16, #tpu.memory_space<vmem>>, %arg5: memref<1x128xf32, #tpu.memory_space<vmem>>, %arg6: memref<1x12x12x128xbf16, #tpu.memory_space<vmem>>) attributes {dimension_semantics = [#tpu.dimension_semantics<parallel>], iteration_bounds = array<i64: 2>, scalar_prefetch = 0 : i64, scratch_operands = 0 : i64, tpu.core_type = #tpu.core_type<tc>, window_params = [{transform_indices = @transform_0, window_bounds = array<i64: 1, 260, 4>}, {pipeline_mode = #tpu.pipeline_mode<synchronous>, transform_indices = @transform_1, window_bounds = array<i64: 36, 8>}, {pipeline_mode = #tpu.pipeline_mode<synchronous>, transform_indices = @transform_2, window_bounds = array<i64: 1, 8>}, {pipeline_mode = #tpu.pipeline_mode<synchronous>, transform_indices = @transform_3, window_bounds = array<i64: 72, 128>}, {pipeline_mode = #tpu.pipeline_mode<synchronous>, transform_indices = @transform_4, window_bounds = array<i64: 1, 128>}, {transform_indices = @transform_5, window_bounds = array<i64: 1, 12, 12, 128>}]} {
    %c0 = arith.constant 0 : index
    %c0_0 = arith.constant 0 : index
    %c0_1 = arith.constant 0 : index
    %0 = vector.load %arg1[%c0, %c0_0, %c0_1] : memref<1x260x4xbf16, #tpu.memory_space<vmem>>, vector<1x260x4xbf16>
    %1 = vector.shape_cast %0 : vector<1x260x4xbf16> to vector<260x4xbf16>
    %2 = vector.extract_strided_slice %1 {offsets = [0, 0], sizes = [226, 4], strides = [1, 1]} : vector<260x4xbf16> to vector<226x4xbf16>
    %3 = vector.extract_strided_slice %1 {offsets = [1, 0], sizes = [226, 4], strides = [1, 1]} : vector<260x4xbf16> to vector<226x4xbf16>
    %4 = vector.extract_strided_slice %1 {offsets = [2, 0], sizes = [226, 4], strides = [1, 1]} : vector<260x4xbf16> to vector<226x4xbf16>
    %5 = vector.extract_strided_slice %1 {offsets = [16, 0], sizes = [226, 4], strides = [1, 1]} : vector<260x4xbf16> to vector<226x4xbf16>
    %6 = vector.extract_strided_slice %1 {offsets = [17, 0], sizes = [226, 4], strides = [1, 1]} : vector<260x4xbf16> to vector<226x4xbf16>
    %7 = vector.extract_strided_slice %1 {offsets = [18, 0], sizes = [226, 4], strides = [1, 1]} : vector<260x4xbf16> to vector<226x4xbf16>
    %8 = vector.extract_strided_slice %1 {offsets = [32, 0], sizes = [226, 4], strides = [1, 1]} : vector<260x4xbf16> to vector<226x4xbf16>
    %9 = vector.extract_strided_slice %1 {offsets = [33, 0], sizes = [226, 4], strides = [1, 1]} : vector<260x4xbf16> to vector<226x4xbf16>
    %10 = vector.extract_strided_slice %1 {offsets = [34, 0], sizes = [226, 4], strides = [1, 1]} : vector<260x4xbf16> to vector<226x4xbf16>
    %11 = tpu.concatenate %2, %3, %4, %5, %6, %7, %8, %9, %10 in 1 : vector<226x4xbf16>, vector<226x4xbf16>, vector<226x4xbf16>, vector<226x4xbf16>, vector<226x4xbf16>, vector<226x4xbf16>, vector<226x4xbf16>, vector<226x4xbf16>, vector<226x4xbf16> -> vector<226x36xbf16>
    %c0_2 = arith.constant 0 : index
    %c0_3 = arith.constant 0 : index
    %12 = vector.load %arg2[%c0_2, %c0_3] : memref<36x8xbf16, #tpu.memory_space<vmem>>, vector<36x8xbf16>
    %cst = arith.constant dense<0.000000e+00> : vector<226x8xf32>
    %13 = tpu.matmul %11, %12, %cst {dimension_numbers = #tpu.dot_dimension_numbers<[1], [0], [0], [1], [0, 0, 1, 1], [], []>} : vector<226x36xbf16>, vector<36x8xbf16>, vector<226x8xf32> -> vector<226x8xf32>
    %c0_4 = arith.constant 0 : index
    %c0_5 = arith.constant 0 : index
    %14 = vector.load %arg3[%c0_4, %c0_5] : memref<1x8xf32, #tpu.memory_space<vmem>>, vector<1x8xf32>
    %15 = vector.broadcast %14 : vector<1x8xf32> to vector<226x8xf32>
    %16 = arith.addf %13, %15 : vector<226x8xf32>
    %cst_6 = arith.constant 0.000000e+00 : f32
    %17 = vector.broadcast %cst_6 : f32 to vector<226x8xf32>
    %18 = arith.maximumf %16, %17 : vector<226x8xf32>
    %19 = arith.truncf %18 : vector<226x8xf32> to vector<226x8xbf16>
    %20 = vector.extract_strided_slice %19 {offsets = [0, 0], sizes = [192, 8], strides = [1, 1]} : vector<226x8xbf16> to vector<192x8xbf16>
    %21 = vector.extract_strided_slice %19 {offsets = [1, 0], sizes = [192, 8], strides = [1, 1]} : vector<226x8xbf16> to vector<192x8xbf16>
    %22 = vector.extract_strided_slice %19 {offsets = [2, 0], sizes = [192, 8], strides = [1, 1]} : vector<226x8xbf16> to vector<192x8xbf16>
    %23 = vector.extract_strided_slice %19 {offsets = [16, 0], sizes = [192, 8], strides = [1, 1]} : vector<226x8xbf16> to vector<192x8xbf16>
    %24 = vector.extract_strided_slice %19 {offsets = [17, 0], sizes = [192, 8], strides = [1, 1]} : vector<226x8xbf16> to vector<192x8xbf16>
    %25 = vector.extract_strided_slice %19 {offsets = [18, 0], sizes = [192, 8], strides = [1, 1]} : vector<226x8xbf16> to vector<192x8xbf16>
    %26 = vector.extract_strided_slice %19 {offsets = [32, 0], sizes = [192, 8], strides = [1, 1]} : vector<226x8xbf16> to vector<192x8xbf16>
    %27 = vector.extract_strided_slice %19 {offsets = [33, 0], sizes = [192, 8], strides = [1, 1]} : vector<226x8xbf16> to vector<192x8xbf16>
    %28 = vector.extract_strided_slice %19 {offsets = [34, 0], sizes = [192, 8], strides = [1, 1]} : vector<226x8xbf16> to vector<192x8xbf16>
    %29 = tpu.concatenate %20, %21, %22, %23, %24, %25, %26, %27, %28 in 1 : vector<192x8xbf16>, vector<192x8xbf16>, vector<192x8xbf16>, vector<192x8xbf16>, vector<192x8xbf16>, vector<192x8xbf16>, vector<192x8xbf16>, vector<192x8xbf16>, vector<192x8xbf16> -> vector<192x72xbf16>
    %c0_7 = arith.constant 0 : index
    %c0_8 = arith.constant 0 : index
    %30 = vector.load %arg4[%c0_7, %c0_8] : memref<72x128xbf16, #tpu.memory_space<vmem>>, vector<72x128xbf16>
    %cst_9 = arith.constant dense<0.000000e+00> : vector<192x128xf32>
    %31 = tpu.matmul %29, %30, %cst_9 {dimension_numbers = #tpu.dot_dimension_numbers<[1], [0], [0], [1], [0, 0, 1, 1], [], []>} : vector<192x72xbf16>, vector<72x128xbf16>, vector<192x128xf32> -> vector<192x128xf32>
    %c0_10 = arith.constant 0 : index
    %c0_11 = arith.constant 0 : index
    %32 = vector.load %arg5[%c0_10, %c0_11] : memref<1x128xf32, #tpu.memory_space<vmem>>, vector<1x128xf32>
    %33 = vector.broadcast %32 : vector<1x128xf32> to vector<192x128xf32>
    %34 = arith.addf %31, %33 : vector<192x128xf32>
    %cst_12 = arith.constant 0.000000e+00 : f32
    %35 = vector.broadcast %cst_12 : f32 to vector<192x128xf32>
    %36 = arith.maximumf %34, %35 : vector<192x128xf32>
    %37 = arith.truncf %36 : vector<192x128xf32> to vector<192x128xbf16>
    %38 = vector.shape_cast %37 : vector<192x128xbf16> to vector<12x16x128xbf16>
    %39 = vector.extract_strided_slice %38 {offsets = [0, 0, 0], sizes = [12, 12, 128], strides = [1, 1, 1]} : vector<12x16x128xbf16> to vector<12x12x128xbf16>
    %c0_13 = arith.constant 0 : index
    %c0_14 = arith.constant 0 : index
    %c0_15 = arith.constant 0 : index
    %c0_16 = arith.constant 0 : index
    %40 = vector.load %arg6[%c0_13, %c0_14, %c0_15, %c0_16] : memref<1x12x12x128xbf16, #tpu.memory_space<vmem>>, vector<1x12x12x128xbf16>
    %41 = vector.shape_cast %40 : vector<1x12x12x128xbf16> to vector<12x12x128xbf16>
    %42 = vector.shape_cast %39 : vector<12x12x128xbf16> to vector<1x12x12x128xbf16>
    tpu.vector_store %arg6[%c0_13, %c0_14, %c0_15, %c0_16], %42 {strides = array<i32>} : memref<1x12x12x128xbf16, #tpu.memory_space<vmem>>, vector<1x12x12x128xbf16>,
    return
  }
  func.func @transform_0(%arg0: i32) -> (i32, i32, i32) {
    %c0_i32 = arith.constant 0 : i32
    %c0_i32_0 = arith.constant 0 : i32
    %c0_i32_1 = arith.constant 0 : i32
    return %arg0, %c0_i32, %c0_i32_0 : i32, i32, i32
  }
  func.func @transform_1(%arg0: i32) -> (i32, i32) {
    %c0_i32 = arith.constant 0 : i32
    %c0_i32_0 = arith.constant 0 : i32
    %c0_i32_1 = arith.constant 0 : i32
    return %c0_i32, %c0_i32_0 : i32, i32
  }
  func.func @transform_2(%arg0: i32) -> (i32, i32) {
    %c0_i32 = arith.constant 0 : i32
    %c0_i32_0 = arith.constant 0 : i32
    %c0_i32_1 = arith.constant 0 : i32
    return %c0_i32, %c0_i32_0 : i32, i32
  }
  func.func @transform_3(%arg0: i32) -> (i32, i32) {
    %c0_i32 = arith.constant 0 : i32
    %c0_i32_0 = arith.constant 0 : i32
    %c0_i32_1 = arith.constant 0 : i32
    return %c0_i32, %c0_i32_0 : i32, i32
  }
  func.func @transform_4(%arg0: i32) -> (i32, i32) {
    %c0_i32 = arith.constant 0 : i32
    %c0_i32_0 = arith.constant 0 : i32
    %c0_i32_1 = arith.constant 0 : i32
    return %c0_i32, %c0_i32_0 : i32, i32
  }
  func.func @transform_5(%arg0: i32) -> (i32, i32, i32, i32) {
    %c0_i32 = arith.constant 0 : i32
    %c0_i32_0 = arith.constant 0 : i32
    %c0_i32_1 = arith.constant 0 : i32
    %c0_i32_2 = arith.constant 0 : i32
    return %arg0, %c0_i32, %c0_i32_0, %c0_i32_1 : i32, i32, i32, i32
  }
}

</mosaic_0001>

<bundles_post_ra>
// kernel: double_conv_forward.1
= control target key start
LH: loop header
LB: loop body
LE: loop exit
PB: predicated region body
PF: predicated region fallthrough
CT: control target
= control target key end

     0   :  { %s2586_s18 = smov 0   ;;  %s3649_s0 = inlined_call_operand.vmem [shape: bf16[2,260,4], index: 0, kind: input, shape index: {}]   ;;  %s3650_s1 = inlined_call_operand.vmem [shape: bf16[36,8], index: 1, kind: input, shape index: {}]   ;;  %s3651_s2 = inlined_call_operand.vmem [shape: f32[1,8], index: 2, kind: input, shape index: {}]   ;;  %s3652_s3 = inlined_call_operand.vmem [shape: bf16[72,128], index: 3, kind: input, shape index: {}]   ;;  %s3653_s4 = inlined_call_operand.vmem [shape: f32[1,128], index: 4, kind: input, shape index: {}]   ;;  %s3654_s5 = inlined_call_operand.vmem [shape: bf16[2,12,12,128], index: 5, kind: output, shape index: {}]  }
   0x1 LB: > { %s2228_s19 = sadd.s32 4294967295, %s2540_s18   ;;  %p2232_p0 = scmp.ge.s32.totalorder %s2540_s18, 1  ;;  %s2540_s18 = sphi %s2586_s18, %s15_s18  }
   0x2   : > { %p187_p1 = scmp.lt.s32.totalorder %s2540_s18, 3 }
   0x4   : > { %p188_p2 = pnand %p2232_p0, %p187_p1 }
   0x5   : > { %p215_p3 = scmp.lt.s32.totalorder (!%p188_p2), %s2228_s19, 1  ;;  %vm482_vm0 = vcmask (!%p188_p2), 1046528   ;;  %v2518_v0 = vld [vmem:[%s3650_s1] sm:$0xff] (!%p188_p2)   ;;  %v2542_v1 = vmov (!%p188_p2), 0.0   ;;  %s2543_s26 = smov (!%p188_p2), 12   ;;  %v2519_v28 = vld [vmem:[%s3650_s1 + $0x8] sm:$0xff] (!%p188_p2)  }
   0x6   : > { %191 = sbr.rel (%p188_p2) target bundleno = 1084 (0x43c), region = 40  ;;  %2376 = vmatprep.subr.bf16.mxu0 (!%p188_p2), %v2542_v1  ;;  %2476 = vmatprep.subr.bf16.mxu1 (!%p188_p2), %v2542_v1  ;;  %s2544_s27 = smov (!%p188_p2), 8   ;;  %vm332_vm1 = vsmask.f32 (!%p188_p2), 7424  ;;  %vm1080_vm2 = vcmask (!%p188_p2), 1041408   ;;  %vm2551_vm3 = vmmov (!%p188_p2), 0  }
   0x7   : > { %2377 = vmatpush3.bf16.msra.mxu0 (!%p188_p2), %v2518_v0  ;;  %2479 = vmatpush3.bf16.msra.mxu1 (!%p188_p2), %v2518_v0  ;;  %s2545_s28 = smov (!%p188_p2), 24   ;;  %s2546_s29 = smov (!%p188_p2), 20   ;;  %v2520_v32 = vld [vmem:[%s3650_s1 + $0x10] ss:$0 sps:$4 sm:$0x33] (!%p188_p2)   ;;  %vm774_vm4 = vcmask (!%p188_p2), 31744  }
   0x8   : > { %2378 = vmatprep.subr.bf16.mxu0 (!%p188_p2), %v2542_v1  ;;  %2477 = vmatprep.subr.bf16.mxu1 (!%p188_p2), %v2542_v1  ;;  %s2547_s30 = smov (!%p188_p2), 32   ;;  %s2548_s6 = smov (!%p188_p2), 4   ;;  %v1082_v36 = vsel (!%p188_p2), %vm1080_vm2, %v2520_v32, 0  ;;  %vm805_vm5 = vcmask (!%p188_p2), 64512   ;;  %vm836_vm6 = vcmask (!%p188_p2), 97280   ;;  %vm867_vm7 = vcmask (!%p188_p2), 130048  }
   0x9   : > { %s2549_s9 = smov (!%p188_p2), 28   ;;  %s2550_s10 = smov (!%p188_p2), 16   ;;  %2382 = vmatprep.mubr.msk.bf16.mxu0 (!%p188_p2), %vm2551_vm3, %v2542_v1  ;;  %2426 = vmatprep.mubr.msk.bf16.mxu1 (!%p188_p2), %vm2551_vm3, %v2542_v1  ;;  %vm898_vm8 = vcmask (!%p188_p2), 162816   ;;  %vm929_vm9 = vcmask (!%p188_p2), 195584   ;;  %vm960_vm10 = vcmask (!%p188_p2), 228352   ;;  %vm991_vm11 = vcmask (!%p188_p2), 261120  }
   0xa   : > { %vm1049_vm12 = vcmask (!%p188_p2), 293888   ;;  %s2552_s15 = smov (!%p188_p2), 48   ;;  %s2553_s16 = smov (!%p188_p2), 64   ;;  %vm1896_vm13 = vcmask (!%p188_p2), 1043456   ;;  %vm1728_vm14 = vcmask (!%p188_p2), 326656   ;;  %vm1753_vm15 = vcmask (!%p188_p2), 392192  }
   0xb   : > { %2379 = vmatpush3.bf16.msra.mxu0 (!%p188_p2), %v2519_v28  ;;  %2480 = vmatpush3.bf16.msra.mxu1 (!%p188_p2), %v2519_v28  ;;  %s2554_s17 = smov (!%p188_p2), 40   ;;  %vm1778_vm2 = vcmask (!%p188_p2), 457728  }
   0xc   : > { %2380 = vmatprep.subr.bf16.mxu0 (!%p188_p2), %v2542_v1  ;;  %2478 = vmatprep.subr.bf16.mxu1 (!%p188_p2), %v2542_v1 }
   0xd   : > { %s3656_s19 = smov (!%p215_p3, %s2228_s19), 1 }
   0xe   : > { %s2483_s20 = smul.u32 132, %s3656_s19 }
   0xf   : > { %2381 = vmatpush3.bf16.msra.mxu0 %v1082_v36  ;;  %2481 = vmatpush3.bf16.msra.mxu1 %v1082_v36 }
  0x10   : > { %s2603_s25 = scalar_lea.vmem %s3649_s0, %s2483_s20  ;;  %s2555_s20 = smov 56  }
  0x11   : > { %v2608_v2 = vld [vmem:[%s2603_s25 + $0x8] sm:$0xff]   ;;  %v2611_v3 = vld [vmem:[%s2603_s25] sm:$0xff]   ;;  %v2619_v5 = vld [vmem:[%s2603_s25 + $0x10] sm:$0xff]  }
  0x12   : > { %548 = vrot.lane.b32.xlu1 %v2608_v2, %s2543_s26  ;;  %v484_v4 = vrot.slane %v2608_v2, 1  ;;  %v483_v6 = vrot.slane %v2611_v3, 1  ;;  %v2623_v7 = vld [vmem:[%s2603_s25 + $0x18] sm:$0xff]   ;;  %v486_v8 = vrot.slane %v2619_v5, 1  ;;  %v334_v9 = vshrl.u32 %v2611_v3, 16  ;;  %v2655_v31 = vld [vmem:[%s2603_s25 + $0x20] sm:$0xff]  }
  0x13   : > { %v336_v10 = vshll.u32 %v2611_v3, 16  ;;  %v341_v11 = vshll.u32 %v2608_v2, 16  ;;  %v488_v13 = vrot.slane %v2623_v7, 1  ;;  %v349_v14 = vshll.u32 %v2619_v5, 16  ;;  %v2680_v41 = vld [vmem:[%s2603_s25 + $0x28] sm:$0xff]   ;;  %v2698_v49 = vld [vmem:[%s2603_s25 + $0x30] sm:$0xff]  }
  0x14   : > { %v485_v12 = vsel %vm482_vm0, %v483_v6, %v484_v4  ;;  %v487_v15 = vsel %vm482_vm0, %v484_v4, %v486_v8  ;;  %v353_v18 = vshrl.u32 %v2619_v5, 16  ;;  %v357_v21 = vshll.u32 %v2623_v7, 16  ;;  %v2716_v57 = vld [vmem:[%s2603_s25 + $0x38] sm:$0xff]   ;;  %v2734_v4 = vld [vmem:[%s2603_s25 + $0x40] sm:$0xff]  }
  0x15   : > { %512 = vrot.lane.b32.xlu0 %v485_v12, %s2544_s27  ;;  %v338_v16 = vrot.slane %v336_v10, 1  ;;  %v343_v17 = vrot.slane %v341_v11, 1  ;;  %v489_v19 = vsel %vm482_vm0, %v486_v8, %v488_v13  ;;  %v351_v20 = vrot.slane %v349_v14, 1  ;;  %v2752_v14 = vld [vmem:[%s2603_s25 + $0x48] sm:$0xff]  }
  0x16   : > { %664 = vrot.lane.b32.xlu1 %v2619_v5, %s2545_s28  ;;  %v345_v22 = vshrl.u32 %v2608_v2, 16  ;;  %v359_v26 = vrot.slane %v357_v21, 1  ;;  %v490_v33 = vrot.slane %v2655_v31, 1  ;;  %v361_v34 = vshrl.u32 %v2623_v7, 16 }
  0x17   : > { %v339_v23 = vor.u32 %v338_v16, %v334_v9  ;;  %v355_v25 = vor.u32 %v353_v18, %v351_v20  ;;  %v365_v35 = vshll.u32 %v2655_v31, 16  ;;  %v492_v42 = vrot.slane %v2680_v41, 1 }
  0x18   : > { %v347_v27 = vor.u32 %v345_v22, %v343_v17  ;;  %v491_v37 = vsel %vm482_vm0, %v488_v13, %v490_v33  ;;  %v363_v38 = vor.u32 %v361_v34, %v359_v26  ;;  %v369_v43 = vshrl.u32 %v2655_v31, 16  ;;  %v2770_v22 = vld [vmem:[%s2603_s25 + $0x50] sm:$0xff]  }
  0x19   : > { %628 = vrot.lane.b32.xlu0 %v487_v15, %s2546_s29  ;;  %v344_v24 = vsel %vm332_vm1, %v339_v23, %v343_v17  ;;  %v360_v29 = vsel %vm332_vm1, %v355_v25, %v359_v26  ;;  %v367_v39 = vrot.slane %v365_v35, 1  ;;  %v373_v44 = vshll.u32 %v2680_v41, 16 }
  0x1a   : > { %744 = vrot.lane.b32.xlu1 %v489_v19, %s2547_s30  ;;  %v352_v30 = vsel %vm332_vm1, %v347_v27, %v351_v20  ;;  %v493_v45 = vsel %vm482_vm0, %v490_v33, %v492_v42  ;;  %v494_v50 = vrot.slane %v2698_v49, 1  ;;  %v377_v51 = vshrl.u32 %v2680_v41, 16 }
  0x1b   : > { %v368_v40 = vsel %vm332_vm1, %v363_v38, %v367_v39  ;;  %v371_v46 = vor.u32 %v369_v43, %v367_v39  ;;  %v375_v47 = vrot.slane %v373_v44, 1  ;;  %v381_v52 = vshll.u32 %v2698_v49, 16 }
  0x1c   : > { %v495_v53 = vsel %vm482_vm0, %v492_v42, %v494_v50  ;;  %v496_v58 = vrot.slane %v2716_v57, 1  ;;  %v385_v59 = vshrl.u32 %v2698_v49, 16  ;;  %v389_v60 = vshll.u32 %v2716_v57, 16 }
  0x1d   : > { %452 = vrot.lane.b32.xlu0 %v344_v24, %s2548_s6  ;;  %v376_v48 = vsel %vm332_vm1, %v371_v46, %v375_v47  ;;  %v379_v54 = vor.u32 %v377_v51, %v375_v47  ;;  %v383_v55 = vrot.slane %v381_v52, 1  ;;  %v498_v6 = vrot.slane %v2734_v4, 1 }
  0x1e   : > { %514 = vrot.lane.b32.xlu1 %v487_v15, %s2544_s27  ;;  %v497_v61 = vsel %vm482_vm0, %v494_v50, %v496_v58  ;;  %v391_v63 = vrot.slane %v389_v60, 1  ;;  %v393_v8 = vshrl.u32 %v2716_v57, 16  ;;  %v397_v9 = vshll.u32 %v2734_v4, 16  ;;  %v2815_v60 = vld [vmem:[%s2603_s25 + $0x60] sm:$0xff]  }
  0x1f   : > { %v384_v56 = vsel %vm332_vm1, %v379_v54, %v383_v55  ;;  %v387_v62 = vor.u32 %v385_v59, %v383_v55  ;;  %v499_v10 = vsel %vm482_vm0, %v496_v58, %v498_v6  ;;  %v500_v15 = vrot.slane %v2752_v14, 1 }
  0x20   : > { %v395_v11 = vor.u32 %v393_v8, %v391_v63  ;;  %v399_v12 = vrot.slane %v397_v9, 1  ;;  %v401_v16 = vshrl.u32 %v2734_v4, 16  ;;  %v405_v17 = vshll.u32 %v2752_v14, 16 }
  0x21   : > { %710 = vrot.lane.b32.xlu0 %v360_v29, %s2549_s9  ;;  %v392_v0 = vsel %vm332_vm1, %v387_v62, %v391_v63  ;;  %v501_v18 = vsel %vm482_vm0, %v498_v6, %v500_v15  ;;  %v502_v24 = vrot.slane %v2770_v22, 1  ;;  %v409_v25 = vshrl.u32 %v2752_v14, 16 }
  0x22   : > { %594 = vrot.lane.b32.xlu1 %v352_v30, %s2550_s10  ;;  %v400_v13 = vsel %vm332_vm1, %v395_v11, %v399_v12  ;;  %v407_v20 = vrot.slane %v405_v17, 1  ;;  %v413_v26 = vshll.u32 %v2770_v22, 16  ;;  %v429_v8 = vshll.u32 %v2815_v60, 16 }
  0x24   : > { %v415_v32 = vrot.slane %v413_v26, 1 }
  0x25   : > { %454 = vrot.lane.b32.xlu0 %v352_v30, %s2548_s6  ;;  %v411_v30 = vor.u32 %v409_v25, %v407_v20 }
  0x26   : > { %596 = vrot.lane.b32.xlu1 %v360_v29, %s2550_s10 }
  0x27   : > { %v416_v35 = vsel %vm332_vm1, %v411_v30, %v415_v32 }
  0x29   : > { %550 = vrot.lane.b32.xlu0 %v2619_v5, %s2543_s26 }
  0x2a   : > { %666 = vrot.lane.b32.xlu1 %v2623_v7, %s2545_s28 }
  0x2d   : > { %630 = vrot.lane.b32.xlu0 %v489_v19, %s2546_s29 }
  0x2e   : > { %746 = vrot.lane.b32.xlu1 %v491_v37, %s2547_s30 }
  0x31   : > { %712 = vrot.lane.b32.xlu0 %v368_v40, %s2549_s9 }
  0x32   : > { %516 = vrot.lane.b32.xlu1 %v489_v19, %s2544_s27  ;;  %v403_v19 = vor.u32 %v401_v16, %v399_v12 }
  0x34   : > { %v408_v21 = vsel %vm332_vm1, %v403_v19, %v407_v20 }
  0x35   : > { %456 = vrot.lane.b32.xlu0 %v360_v29, %s2548_s6  ;;  %v503_v29 = vsel %vm482_vm0, %v500_v15, %v502_v24  ;;  %v431_v15 = vrot.slane %v429_v8, 1 }
  0x36   : > { %598 = vrot.lane.b32.xlu1 %v368_v40, %s2550_s10 }
  0x39   : > { %552 = vrot.lane.b32.xlu0 %v2623_v7, %s2543_s26 }
  0x3a   : > { %668 = vrot.lane.b32.xlu1 %v2655_v31, %s2545_s28 }
  0x3d   : > { %632 = vrot.lane.b32.xlu0 %v491_v37, %s2546_s29 }
  0x3e   : > { %748 = vrot.lane.b32.xlu1 %v493_v45, %s2547_s30 }
  0x41   : > { %714 = vrot.lane.b32.xlu0 %v376_v48, %s2549_s9 }
  0x42   : > { %518 = vrot.lane.b32.xlu1 %v491_v37, %s2544_s27 }
  0x45   : > { %458 = vrot.lane.b32.xlu0 %v368_v40, %s2548_s6  ;;  %v2791_v40 = vld [vmem:[%s2603_s25 + $0x58] sm:$0xff]  }
  0x46   : > { %600 = vrot.lane.b32.xlu1 %v376_v48, %s2550_s10  ;;  %v504_v47 = vrot.slane %v2791_v40, 1  ;;  %v421_v50 = vshll.u32 %v2791_v40, 16  ;;  %v425_v6 = vshrl.u32 %v2791_v40, 16 }
  0x48   : > { %v423_v59 = vrot.slane %v421_v50, 1 }
  0x49   : > { %554 = vrot.lane.b32.xlu0 %v2655_v31, %s2543_s26 }
  0x4a   : > { %670 = vrot.lane.b32.xlu1 %v2680_v41, %s2545_s28 }
  0x4d   : > { %634 = vrot.lane.b32.xlu0 %v493_v45, %s2546_s29 }
  0x4e   : > { %750 = vrot.lane.b32.xlu1 %v495_v53, %s2547_s30 }
  0x51   : > { %716 = vrot.lane.b32.xlu0 %v384_v56, %s2549_s9 }
  0x52   : > { %520 = vrot.lane.b32.xlu1 %v493_v45, %s2544_s27 }
  0x55   : > { %460 = vrot.lane.b32.xlu0 %v376_v48, %s2548_s6  ;;  %v417_v48 = vshrl.u32 %v2770_v22, 16 }
  0x56   : > { %602 = vrot.lane.b32.xlu1 %v384_v56, %s2550_s10 }
  0x57   : > { %v419_v58 = vor.u32 %v417_v48, %v415_v32 }
  0x59   : > { %556 = vrot.lane.b32.xlu0 %v2680_v41, %s2543_s26 }
  0x5a   : > { %672 = vrot.lane.b32.xlu1 %v2698_v49, %s2545_s28 }
  0x5d   : > { %636 = vrot.lane.b32.xlu0 %v495_v53, %s2546_s29 }
  0x5e   : > { %752 = vrot.lane.b32.xlu1 %v497_v61, %s2547_s30 }
  0x61   : > { %718 = vrot.lane.b32.xlu0 %v392_v0, %s2549_s9 }
  0x62   : > { %522 = vrot.lane.b32.xlu1 %v495_v53, %s2544_s27 }
  0x65   : > { %462 = vrot.lane.b32.xlu0 %v384_v56, %s2548_s6  ;;  %v2812_v56 = vsel %vm482_vm0, %v502_v24, %v504_v47  ;;  %v2846_v24 = vld [vmem:[%s2603_s25 + $0x68] sm:$0xff]  }
  0x66   : > { %604 = vrot.lane.b32.xlu1 %v392_v0, %s2550_s10  ;;  %v437_v30 = vshll.u32 %v2846_v24, 16 }
  0x69   : > { %558 = vrot.lane.b32.xlu0 %v2698_v49, %s2543_s26 }
  0x6a   : > { %674 = vrot.lane.b32.xlu1 %v2716_v57, %s2545_s28 }
  0x6d   : > { %638 = vrot.lane.b32.xlu0 %v497_v61, %s2546_s29 }
  0x6e   : > { %754 = vrot.lane.b32.xlu1 %v499_v10, %s2547_s30 }
  0x71   : > { %720 = vrot.lane.b32.xlu0 %v400_v13, %s2549_s9 }
  0x72   : > { %524 = vrot.lane.b32.xlu1 %v497_v61, %s2544_s27 }
  0x75   : > { %464 = vrot.lane.b32.xlu0 %v392_v0, %s2548_s6  ;;  %v2825_v0 = vsel %vm332_vm1, %v419_v58, %v423_v59 }
  0x76   : > { %606 = vrot.lane.b32.xlu1 %v400_v13, %s2550_s10 }
  0x79   : > { %560 = vrot.lane.b32.xlu0 %v2716_v57, %s2543_s26 }
  0x7a   : > { %676 = vrot.lane.b32.xlu1 %v2734_v4, %s2545_s28 }
  0x7d   : > { %640 = vrot.lane.b32.xlu0 %v499_v10, %s2546_s29 }
  0x7e   : > { %756 = vrot.lane.b32.xlu1 %v501_v18, %s2547_s30 }
  0x81   : > { %722 = vrot.lane.b32.xlu0 %v408_v21, %s2549_s9 }
  0x82   : > { %526 = vrot.lane.b32.xlu1 %v499_v10, %s2544_s27 }
  0x84   : > { %v549_v23 = vpop.permute.xlu1 %548 }
  0x85   : > { %466 = vrot.lane.b32.xlu0 %v400_v13, %s2548_s6  ;;  %v427_v13 = vor.u32 %v425_v6, %v423_v59 }
  0x86   : > { %608 = vrot.lane.b32.xlu1 %v408_v21, %s2550_s10 }
  0x87   : > { %v513_v27 = vpop.permute.xlu0 %512 }
  0x88   : > { %v665_v28 = vpop.permute.xlu1 %664 }
  0x89   : > { %562 = vrot.lane.b32.xlu0 %v2734_v4, %s2543_s26 }
  0x8a   : > { %678 = vrot.lane.b32.xlu1 %v2752_v14, %s2545_s28 }
  0x8b   : > { %v629_v33 = vpop.permute.xlu0 %628 }
  0x8c   : > { %v745_v34 = vpop.permute.xlu1 %744 }
  0x8d   : > { %642 = vrot.lane.b32.xlu0 %v501_v18, %s2546_s29 }
  0x8e   : > { %758 = vrot.lane.b32.xlu1 %v503_v29, %s2547_s30 }
  0x8f   : > { %v453_v36 = vpop.permute.xlu0 %452 }
  0x90   : > { %v515_v37 = vpop.permute.xlu1 %514  ;;  %v776_v38 = vsel %vm774_vm4, %v2611_v3, %v453_v36 }
  0x91   : > { %v807_v39 = vsel %vm805_vm5, %v776_v38, %v513_v27  ;;  %724 = vrot.lane.b32.xlu0 %v416_v35, %s2549_s9  ;;  %v439_v38 = vrot.slane %v437_v30, 1 }
  0x92   : > { %528 = vrot.lane.b32.xlu1 %v501_v18, %s2544_s27  ;;  %v838_v44 = vsel %vm836_vm6, %v807_v39, %v549_v23  ;;  %v506_v23 = vrot.slane %v2815_v60, 1 }
  0x93   : > { %v711_v42 = vpop.permute.xlu0 %710 }
  0x94   : > { %v595_v43 = vpop.permute.xlu1 %594 }
  0x95   : > { %v869_v45 = vsel %vm867_vm7, %v838_v44, %v595_v43  ;;  %468 = vrot.lane.b32.xlu0 %v408_v21, %s2548_s6  ;;  %v2842_v21 = vsel %vm332_vm1, %v427_v13, %v431_v15 }
  0x96   : > { %v900_v3 = vsel %vm898_vm8, %v869_v45, %v629_v33  ;;  %610 = vrot.lane.b32.xlu1 %v416_v35, %s2550_s10 }
  0x97   : > { %v931_v46 = vsel %vm929_vm9, %v900_v3, %v665_v28  ;;  %v455_v51 = vpop.permute.xlu0 %454  ;;  %v2857_v28 = vsel %vm482_vm0, %v504_v47, %v506_v23  ;;  %v441_v47 = vshrl.u32 %v2846_v24, 16 }
  0x98   : > { %v597_v52 = vpop.permute.xlu1 %596  ;;  %v962_v53 = vsel %vm960_vm10, %v931_v46, %v711_v42  ;;  %v778_v54 = vsel %vm774_vm4, %v2608_v2, %v455_v51  ;;  %v2884_v46 = vrot.slane %v2846_v24, 1 }
  0x99   : > { %v993_v55 = vsel %vm991_vm11, %v962_v53, %v745_v34  ;;  %564 = vrot.lane.b32.xlu0 %v2752_v14, %s2543_s26  ;;  %v809_v61 = vsel %vm805_vm5, %v778_v54, %v515_v37  ;;  %v2900_v58 = vor.u32 %v441_v47, %v439_v38 }
  0x9a   : > { %680 = vrot.lane.b32.xlu1 %v2770_v22, %s2545_s28  ;;  %2383 = vmatmul.mubr.msk.bf16.vlgmr.msra.gmra.mrb[0].mxu0 %vm1049_vm12, %v993_v55  ;;  %v2898_v55 = vsel %vm482_vm0, %v506_v23, %v2884_v46 }
  0x9b   : > { %v551_v2 = vpop.permute.xlu0 %550  ;;  %2386 = vmatprep.mubr.msk.bf16.mxu0 %vm2551_vm3, %v2542_v1 }
  0x9c   : > { %v667_v62 = vpop.permute.xlu1 %666  ;;  %v840_v63 = vsel %vm836_vm6, %v809_v61, %v551_v2 }
  0x9d   : > { %644 = vrot.lane.b32.xlu0 %v503_v29, %s2546_s29  ;;  %v871_v9 = vsel %vm867_vm7, %v840_v63, %v597_v52 }
  0x9e   : > { %760 = vrot.lane.b32.xlu1 %v2812_v56, %s2547_s30 }
  0x9f   : > { %v631_v10 = vpop.permute.xlu0 %630 }
  0xa0   : > { %v747_v11 = vpop.permute.xlu1 %746  ;;  %v902_v12 = vsel %vm898_vm8, %v871_v9, %v631_v10 }
  0xa1   : > { %726 = vrot.lane.b32.xlu0 %v2825_v0, %s2549_s9  ;;  %v933_v16 = vsel %vm929_vm9, %v902_v12, %v667_v62 }
  0xa2   : > { %530 = vrot.lane.b32.xlu1 %v503_v29, %s2544_s27  ;;  %v433_v29 = vshrl.u32 %v2815_v60, 16 }
  0xa3   : > { %v713_v17 = vpop.permute.xlu0 %712 }
  0xa4   : > { %v517_v18 = vpop.permute.xlu1 %516  ;;  %v964_v19 = vsel %vm960_vm10, %v933_v16, %v713_v17  ;;  %v435_v37 = vor.u32 %v433_v29, %v431_v15 }
  0xa5   : > { %470 = vrot.lane.b32.xlu0 %v416_v35, %s2548_s6  ;;  %v995_v20 = vsel %vm991_vm11, %v964_v19, %v747_v11  ;;  %v2863_v35 = vld [vmem:[%s2603_s25 + $0x70] sm:$0xf] }
  0xa6   : > { %566 = vrot.lane.b32.xlu1 %v2770_v22, %s2543_s26  ;;  %2387 = vmatmul.mubr.msk.bf16.gmra.mrb[4].mxu0 %vm1049_vm12, %v995_v20  ;;  %v2881_v3 = vsel %vm332_vm1, %v435_v37, %v439_v38 }
  0xa7   : > { %v457_v25 = vpop.permute.xlu0 %456  ;;  %2390 = vmatprep.mubr.msk.bf16.mxu0 %vm2551_vm3, %v2542_v1 }
  0xa8   : > { %v599_v26 = vpop.permute.xlu1 %598  ;;  %v780_v27 = vsel %vm774_vm4, %v2619_v5, %v457_v25  ;;  %v255_v5 = vld [vmem:[%s2603_s25 + $0x74] sm:$0xf] }
  0xa9   : > { %474 = vrot.lane.b32.xlu0 %v2842_v21, %s2548_s6  ;;  %v811_v32 = vsel %vm805_vm5, %v780_v27, %v517_v18  ;;  %v2872_v39 = vcombine.low %v2863_v35, %v255_v5 }
  0xaa   : > { %612 = vrot.lane.b32.xlu1 %v2825_v0, %s2550_s10 }
  0xab   : > { %v553_v33 = vpop.permute.xlu0 %552  ;;  %v579_v48 = vshll.u32 %v2872_v39, 16  ;;  %v2916_v6 = vrot.slane %v2872_v39, 1 }
  0xac   : > { %v669_v34 = vpop.permute.xlu1 %668  ;;  %v842_v36 = vsel %vm836_vm6, %v811_v32, %v553_v33  ;;  %v256_v32 = vld [vmem:[%s2603_s25 + $0x78] sm:$0xf] }
  0xad   : > { %534 = vrot.lane.b32.xlu0 %v2857_v28, %s2544_s27  ;;  %v873_v42 = vsel %vm867_vm7, %v842_v36, %v599_v26  ;;  %v2902_v59 = vrot.slane %v579_v48, 1  ;;  %v2975_v48 = vcombine.low %v2863_v35, %v2863_v35 }
  0xae   : > { %646 = vrot.lane.b32.xlu1 %v2812_v56, %s2546_s29 }
  0xaf   : > { %v633_v43 = vpop.permute.xlu0 %632  ;;  %v582_v63 = vsel %vm332_vm1, %v2900_v58, %v2902_v59 }
  0xb0   : > { %v749_v44 = vpop.permute.xlu1 %748  ;;  %v904_v45 = vsel %vm898_vm8, %v873_v42, %v633_v43 }
  0xb1   : > { %570 = vrot.lane.b32.xlu0 %v2815_v60, %s2543_s26  ;;  %v935_v50 = vsel %vm929_vm9, %v904_v45, %v669_v34 }
  0xb2   : > { %682 = vrot.lane.b32.xlu1 %v2791_v40, %s2545_s28 }
  0xb3   : > { %v715_v51 = vpop.permute.xlu0 %714 }
  0xb4   : > { %v519_v52 = vpop.permute.xlu1 %518  ;;  %v966_v53 = vsel %vm960_vm10, %v935_v50, %v715_v51  ;;  %v2977_v50 = vcombine.low %v256_v32, %v256_v32 }
  0xb5   : > { %616 = vrot.lane.b32.xlu0 %v2881_v3, %s2550_s10  ;;  %v997_v54 = vsel %vm991_vm11, %v966_v53, %v749_v44  ;;  %v583_v44 = vshrl.u32 %v2872_v39, 16 }
  0xb6   : > { %728 = vrot.lane.b32.xlu1 %v2842_v21, %s2549_s9  ;;  %2391 = vmatmul.mubr.msk.bf16.gmra.mrb[8].mxu0 %vm1049_vm12, %v997_v54 }
  0xb7   : > { %v459_v61 = vpop.permute.xlu0 %458  ;;  %2394 = vmatprep.mubr.msk.bf16.mxu0 %vm2551_vm3, %v2542_v1  ;;  %v585_v53 = vor.u32 %v583_v44, %v2902_v59 }
  0xb8   : > { %v601_v2 = vpop.permute.xlu1 %600  ;;  %v782_v62 = vsel %vm774_vm4, %v2623_v7, %v459_v61  ;;  %v625_v7 = vsel %vm482_vm0, %v2884_v46, %v2916_v6  ;;  %v445_v61 = vshll.u32 %v2975_v48, 16 }
  0xb9   : > { %650 = vrot.lane.b32.xlu0 %v2898_v55, %s2546_s29  ;;  %v813_v8 = vsel %vm805_vm5, %v782_v62, %v519_v52  ;;  %v587_v62 = vshll.u32 %v2977_v50, 16 }
  0xba   : > { %762 = vrot.lane.b32.xlu1 %v2857_v28, %s2547_s30  ;;  %v447_v59 = vrot.slane %v445_v61, 1 }
  0xbb   : > { %v555_v9 = vpop.permute.xlu0 %554 }
  0xbc   : > { %v671_v10 = vpop.permute.xlu1 %670  ;;  %v844_v11 = vsel %vm836_vm6, %v813_v8, %v555_v9 }
  0xbd   : > { %686 = vrot.lane.b32.xlu0 %v2846_v24, %s2545_s28  ;;  %v875_v12 = vsel %vm867_vm7, %v844_v11, %v601_v2  ;;  %v510_v2 = vrot.slane %v2975_v48, 1  ;;  %v589_v11 = vrot.slane %v587_v62, 1 }
  0xbe   : > { %732 = vrot.lane.b32.xlu1 %v582_v63, %s2549_s9 }
  0xbf   : > { %v635_v13 = vpop.permute.xlu0 %634 }
  0xc0   : > { %v751_v15 = vpop.permute.xlu1 %750  ;;  %v906_v16 = vsel %vm898_vm8, %v875_v12, %v635_v13 }
  0xc1   : > { %472 = vrot.lane.b32.xlu0 %v2825_v0, %s2548_s6  ;;  %v937_v17 = vsel %vm929_vm9, %v906_v16, %v671_v10  ;;  %v511_v10 = vsel %vm482_vm0, %v2884_v46, %v510_v2  ;;  %v448_v16 = vsel %vm332_vm1, %v2900_v58, %v447_v59 }
  0xc2   : > { %766 = vrot.lane.b32.xlu1 %v625_v7, %s2547_s30 }
  0xc3   : > { %v717_v18 = vpop.permute.xlu0 %716 }
  0xc4   : > { %v521_v19 = vpop.permute.xlu1 %520  ;;  %v968_v20 = vsel %vm960_vm10, %v937_v17, %v717_v18  ;;  %v590_v17 = vsel %vm332_vm1, %v585_v53, %v589_v11  ;;  %v2528_v18 = vld [vmem:[%s2603_s25 + $0x80] ss:$0 sps:$4 sm:$0x33]  }
  0xc5   : > { %532 = vrot.lane.b32.xlu0 %v2812_v56, %s2544_s27  ;;  %v999_v23 = vsel %vm991_vm11, %v968_v20, %v751_v15 }
  0xc6   : > { %568 = vrot.lane.b32.xlu1 %v2791_v40, %s2543_s26  ;;  %2395 = vmatmul.mubr.msk.bf16.gmra.mrb[12].mxu0 %vm1049_vm12, %v999_v23 }
  0xc7   : > { %v461_v0 = vpop.permute.xlu0 %460  ;;  %2398 = vmatprep.mubr.msk.bf16.mxu0 %vm2551_vm3, %v2542_v1 }
  0xc8   : > { %v603_v25 = vpop.permute.xlu1 %602  ;;  %v784_v26 = vsel %vm774_vm4, %v2655_v31, %v461_v0  ;;  %v257_v31 = vld [vmem:[%s2603_s25 + $0x7c] sm:$0xf] }
  0xc9   : > { %476 = vrot.lane.b32.xlu0 %v2881_v3, %s2548_s6  ;;  %v815_v56 = vsel %vm805_vm5, %v784_v26, %v521_v19  ;;  %v2961_v36 = vcombine.low %v256_v32, %v257_v31  ;;  %v703_v26 = vshll.u32 %v2528_v18, 16 }
  0xca   : > { %614 = vrot.lane.b32.xlu1 %v2842_v21, %s2550_s10 }
  0xcb   : > { %v557_v27 = vpop.permute.xlu0 %556  ;;  %v695_v45 = vshll.u32 %v2961_v36, 16  ;;  %v740_v47 = vrot.slane %v2961_v36, 1  ;;  %v699_v58 = vshrl.u32 %v2961_v36, 16 }
  0xcc   : > { %v673_v29 = vpop.permute.xlu1 %672  ;;  %v846_v30 = vsel %vm836_vm6, %v815_v56, %v557_v27  ;;  %v742_v56 = vrot.slane %v2528_v18, 1 }
  0xcd   : > { %536 = vrot.lane.b32.xlu0 %v2898_v55, %s2544_s27  ;;  %v877_v33 = vsel %vm867_vm7, %v846_v30, %v603_v25  ;;  %v697_v54 = vrot.slane %v695_v45, 1  ;;  %v741_v35 = vsel %vm482_vm0, %v2916_v6, %v740_v47  ;;  %v626_v25 = vrot.slane %v2977_v50, 1 }
  0xce   : > { %648 = vrot.lane.b32.xlu1 %v2857_v28, %s2546_s29 }
  0xcf   : > { %v637_v34 = vpop.permute.xlu0 %636  ;;  %v627_v32 = vsel %vm482_vm0, %v2916_v6, %v626_v25  ;;  %v701_v31 = vor.u32 %v699_v58, %v697_v54 }
  0xd0   : > { %v753_v5 = vpop.permute.xlu1 %752  ;;  %v908_v21 = vsel %vm898_vm8, %v877_v33, %v637_v34  ;;  %v705_v33 = vrot.slane %v703_v26, 1  ;;  %v743_v34 = vsel %vm482_vm0, %v740_v47, %v742_v56 }
  0xd1   : > { %572 = vrot.lane.b32.xlu0 %v2846_v24, %s2543_s26  ;;  %v939_v37 = vsel %vm929_vm9, %v908_v21, %v673_v29 }
  0xd2   : > { %684 = vrot.lane.b32.xlu1 %v2815_v60, %s2545_s28  ;;  %v706_v6 = vsel %vm332_vm1, %v701_v31, %v705_v33 }
  0xd3   : > { %v719_v38 = vpop.permute.xlu0 %718 }
  0xd4   : > { %v523_v28 = vpop.permute.xlu1 %522  ;;  %v970_v42 = vsel %vm960_vm10, %v939_v37, %v719_v38 }
  0xd5   : > { %618 = vrot.lane.b32.xlu0 %v582_v63, %s2550_s10  ;;  %v1001_v43 = vsel %vm991_vm11, %v970_v42, %v753_v5 }
  0xd6   : > { %730 = vrot.lane.b32.xlu1 %v2881_v3, %s2549_s9  ;;  %2399 = vmatmul.mubr.msk.bf16.gmra.mrb[16].mxu0 %vm1049_vm12, %v1001_v43 }
  0xd7   : > { %v463_v51 = vpop.permute.xlu0 %462  ;;  %2402 = vmatprep.mubr.msk.bf16.mxu0 %vm2551_vm3, %v2542_v1 }
  0xd8   : > { %v605_v52 = vpop.permute.xlu1 %604  ;;  %v786_v3 = vsel %vm774_vm4, %v2680_v41, %v463_v51 }
  0xd9   : > { %652 = vrot.lane.b32.xlu0 %v625_v7, %s2546_s29  ;;  %v817_v63 = vsel %vm805_vm5, %v786_v3, %v523_v28 }
  0xda   : > { %764 = vrot.lane.b32.xlu1 %v2898_v55, %s2547_s30  ;;  %v698_v55 = vsel %vm332_vm1, %v585_v53, %v697_v54 }
  0xdb   : > { %v559_v41 = vpop.permute.xlu0 %558 }
  0xdc   : > { %v675_v8 = vpop.permute.xlu1 %674  ;;  %v848_v9 = vsel %vm836_vm6, %v817_v63, %v559_v41 }
  0xdd   : > { %688 = vrot.lane.b32.xlu0 %v2872_v39, %s2545_s28  ;;  %v879_v7 = vsel %vm867_vm7, %v848_v9, %v605_v52 }
  0xde   : > { %768 = vrot.lane.b32.xlu1 %v741_v35, %s2547_s30 }
  0xdf   : > { %v639_v12 = vpop.permute.xlu0 %638 }
  0xe0   : > { %v755_v13 = vpop.permute.xlu1 %754  ;;  %v910_v15 = vsel %vm898_vm8, %v879_v7, %v639_v12 }
  0xe1   : > { %734 = vrot.lane.b32.xlu0 %v698_v55, %s2549_s9  ;;  %v941_v19 = vsel %vm929_vm9, %v910_v15, %v675_v8 }
  0xe2   : > { %538 = vrot.lane.b32.xlu1 %v511_v10, %s2544_s27 }
  0xe3   : > { %v721_v46 = vpop.permute.xlu0 %720 }
  0xe4   : > { %v525_v20 = vpop.permute.xlu1 %524  ;;  %v972_v23 = vsel %vm960_vm10, %v941_v19, %v721_v46 }
  0xe5   : > { %478 = vrot.lane.b32.xlu0 %v448_v16, %s2548_s6  ;;  %v1003_v0 = vsel %vm991_vm11, %v972_v23, %v755_v13 }
  0xe6   : > { %620 = vrot.lane.b32.xlu1 %v590_v17, %s2550_s10  ;;  %2403 = vmatmul.mubr.msk.bf16.gmra.mrb[20].mxu0 %vm1049_vm12, %v1003_v0 }
  0xe7   : > { %v465_v27 = vpop.permute.xlu0 %464  ;;  %2406 = vmatprep.mubr.msk.bf16.mxu0 %vm2551_vm3, %v2542_v1 }
  0xe8   : > { %v607_v29 = vpop.permute.xlu1 %606  ;;  %v788_v30 = vsel %vm774_vm4, %v2698_v49, %v465_v27  ;;  %v449_v49 = vshrl.u32 %v2975_v48, 16 }
  0xe9   : > { %574 = vrot.lane.b32.xlu0 %v2872_v39, %s2543_s26  ;;  %v819_v5 = vsel %vm805_vm5, %v788_v30, %v525_v20  ;;  %v591_v39 = vshrl.u32 %v2977_v50, 16 }
  0xea   : > { %690 = vrot.lane.b32.xlu1 %v2961_v36, %s2545_s28  ;;  %v451_v44 = vor.u32 %v449_v49, %v447_v59 }
  0xeb   : > { %v561_v21 = vpop.permute.xlu0 %560  ;;  %v593_v45 = vor.u32 %v591_v39, %v589_v11 }
  0xec   : > { %v677_v37 = vpop.permute.xlu1 %676  ;;  %v850_v38 = vsel %vm836_vm6, %v819_v5, %v561_v21 }
  0xed   : > { %654 = vrot.lane.b32.xlu0 %v627_v32, %s2546_s29  ;;  %v881_v36 = vsel %vm867_vm7, %v850_v38, %v607_v29 }
  0xee   : > { %770 = vrot.lane.b32.xlu1 %v743_v34, %s2547_s30 }
  0xef   : > { %v641_v28 = vpop.permute.xlu0 %640 }
  0xf0   : > { %v757_v42 = vpop.permute.xlu1 %756  ;;  %v912_v43 = vsel %vm898_vm8, %v881_v36, %v641_v28 }
  0xf1   : > { %736 = vrot.lane.b32.xlu0 %v706_v6, %s2549_s9  ;;  %v943_v47 = vsel %vm929_vm9, %v912_v43, %v677_v37 }
  0xf2   : > { %540 = vrot.lane.b32.xlu1 %v510_v2, %s2544_s27  ;;  %v707_v2 = vshrl.u32 %v2528_v18, 16 }
  0xf3   : > { %v723_v51 = vpop.permute.xlu0 %722 }
  0xf4   : > { %v527_v52 = vpop.permute.xlu1 %526  ;;  %v974_v3 = vsel %vm960_vm10, %v943_v47, %v723_v51  ;;  %v709_v9 = vor.u32 %v707_v2, %v705_v33 }
  0xf5   : > { %480 = vrot.lane.b32.xlu0 %v451_v44, %s2548_s6  ;;  %v1005_v53 = vsel %vm991_vm11, %v974_v3, %v757_v42 }
  0xf6   : > { %622 = vrot.lane.b32.xlu1 %v593_v45, %s2550_s10  ;;  %2407 = vmatmul.mubr.msk.bf16.gmra.mrb[24].mxu0 %vm1049_vm12, %v1005_v53 }
  0xf7   : > { %v467_v54 = vpop.permute.xlu0 %466  ;;  %2410 = vmatprep.mubr.msk.bf16.mxu0 %vm2551_vm3, %v2542_v1 }
  0xf8   : > { %v609_v35 = vpop.permute.xlu1 %608  ;;  %v790_v61 = vsel %vm774_vm4, %v2716_v57, %v467_v54 }
  0xf9   : > { %576 = vrot.lane.b32.xlu0 %v2977_v50, %s2543_s26  ;;  %v821_v62 = vsel %vm805_vm5, %v790_v61, %v527_v52 }
  0xfa   : > { %692 = vrot.lane.b32.xlu1 %v2528_v18, %s2545_s28 }
  0xfb   : > { %v563_v63 = vpop.permute.xlu0 %562 }
  0xfc   : > { %v679_v41 = vpop.permute.xlu1 %678  ;;  %v852_v8 = vsel %vm836_vm6, %v821_v62, %v563_v63 }
  0xfd   : > { %656 = vrot.lane.b32.xlu0 %v626_v25, %s2546_s29  ;;  %v883_v55 = vsel %vm867_vm7, %v852_v8, %v609_v35 }
  0xfe   : > { %772 = vrot.lane.b32.xlu1 %v742_v56, %s2547_s30 }
  0xff   : > { %v643_v57 = vpop.permute.xlu0 %642 }
 0x100   : > { %v759_v59 = vpop.permute.xlu1 %758  ;;  %v914_v50 = vsel %vm898_vm8, %v883_v55, %v643_v57 }
 0x101   : > { %738 = vrot.lane.b32.xlu0 %v709_v9, %s2549_s9  ;;  %v945_v10 = vsel %vm929_vm9, %v914_v50, %v679_v41 }
 0x103   : > { %v725_v11 = vpop.permute.xlu0 %724 }
 0x104   : > { %v529_v7 = vpop.permute.xlu1 %528  ;;  %v976_v12 = vsel %vm960_vm10, %v945_v10, %v725_v11 }
 0x105   : > { %v1007_v13 = vsel %vm991_vm11, %v976_v12, %v759_v59 }
 0x106   : > { %2411 = vmatmul.mubr.msk.bf16.gmra.mrb[28].mxu0 %vm1049_vm12, %v1007_v13 }
 0x107   : > { %v469_v15 = vpop.permute.xlu0 %468  ;;  %2414 = vmatprep.mubr.msk.bf16.mxu0 %vm2551_vm3, %v2542_v1 }
 0x108   : > { %v611_v16 = vpop.permute.xlu1 %610  ;;  %v792_v17 = vsel %vm774_vm4, %v2734_v4, %v469_v15 }
 0x109   : > { %v823_v18 = vsel %vm805_vm5, %v792_v17, %v529_v7 }
 0x10b   : > { %v565_v19 = vpop.permute.xlu0 %564 }
 0x10c   : > { %v681_v46 = vpop.permute.xlu1 %680  ;;  %v854_v20 = vsel %vm836_vm6, %v823_v18, %v565_v19 }
 0x10d   : > { %v885_v23 = vsel %vm867_vm7, %v854_v20, %v611_v16 }
 0x10f   : > { %v645_v0 = vpop.permute.xlu0 %644 }
 0x110   : > { %v761_v25 = vpop.permute.xlu1 %760  ;;  %v916_v58 = vsel %vm898_vm8, %v885_v23, %v645_v0 }
 0x111   : > { %v947_v26 = vsel %vm929_vm9, %v916_v58, %v681_v46 }
 0x113   : > { %v727_v56 = vpop.permute.xlu0 %726 }
 0x114   : > { %v531_v27 = vpop.permute.xlu1 %530  ;;  %v978_v29 = vsel %vm960_vm10, %v947_v26, %v727_v56 }
 0x115   : > { %v1009_v4 = vsel %vm991_vm11, %v978_v29, %v761_v25 }
 0x116   : > { %2415 = vmatmul.mubr.msk.bf16.gmra.mrb[32].mxu0 %vm1049_vm12, %v1009_v4 }
 0x117   : > { %v471_v30 = vpop.permute.xlu0 %470  ;;  %2418 = vmatprep.mubr.msk.bf16.mxu0 %vm2551_vm3, %v2542_v1 }
 0x118   : > { %v567_v32 = vpop.permute.xlu1 %566  ;;  %v794_v21 = vsel %vm774_vm4, %v2752_v14, %v471_v30 }
 0x119   : > { %v825_v49 = vsel %vm805_vm5, %v794_v21, %v531_v27 }
 0x11a   : > { %v856_v39 = vsel %vm836_vm6, %v825_v49, %v567_v32 }
 0x11b   : > { %v475_v31 = vpop.permute.xlu0 %474 }
 0x11c   : > { %v613_v33 = vpop.permute.xlu1 %612  ;;  %v798_v44 = vsel %vm774_vm4, %v2791_v40, %v475_v31 }
 0x11d   : > { %v887_v28 = vsel %vm867_vm7, %v856_v39, %v613_v33 }
 0x11f   : > { %v535_v34 = vpop.permute.xlu0 %534 }
 0x120   : > { %v647_v5 = vpop.permute.xlu1 %646  ;;  %v829_v51 = vsel %vm805_vm5, %v798_v44, %v535_v34 }
 0x121   : > { %v918_v42 = vsel %vm898_vm8, %v887_v28, %v647_v5 }
 0x123   : > { %v571_v37 = vpop.permute.xlu0 %570 }
 0x124   : > { %v683_v38 = vpop.permute.xlu1 %682  ;;  %v860_v3 = vsel %vm836_vm6, %v829_v51, %v571_v37 }
 0x125   : > { %v949_v43 = vsel %vm929_vm9, %v918_v42, %v683_v38 }
 0x127   : > { %v617_v6 = vpop.permute.xlu0 %616 }
 0x128   : > { %v729_v36 = vpop.permute.xlu1 %728  ;;  %v891_v53 = vsel %vm867_vm7, %v860_v3, %v617_v6 }
 0x129   : > { %v980_v45 = vsel %vm960_vm10, %v949_v43, %v729_v36 }
 0x12b   : > { %v651_v14 = vpop.permute.xlu0 %650 }
 0x12c   : > { %v763_v47 = vpop.permute.xlu1 %762  ;;  %v922_v54 = vsel %vm898_vm8, %v891_v53, %v651_v14  ;;  %v3140_v53 = vld [vmem:[%s3651_s2] ss:$0 sm:$0xff] }
 0x12d   : > { %v1011_v52 = vsel %vm991_vm11, %v980_v45, %v763_v47 }
 0x12e   : > { %2419 = vmatmul.mubr.msk.bf16.gmra.mrb[36].mxu0 %vm1049_vm12, %v1011_v52 }
 0x12f   : > { %2422 = vmatprep.mubr.msk.bf16.mxu0 %vm2551_vm3, %v2542_v1  ;;  %v687_v40 = vpop.permute.xlu0 %686 }
 0x130   : > { %v733_v35 = vpop.permute.xlu1 %732  ;;  %v953_v61 = vsel %vm929_vm9, %v922_v54, %v687_v40 }
 0x131   : > { %v984_v2 = vsel %vm960_vm10, %v953_v61, %v733_v35 }
 0x133   : > { %v473_v62 = vpop.permute.xlu0 %472 }
 0x134   : > { %v767_v63 = vpop.permute.xlu1 %766  ;;  %v796_v10 = vsel %vm774_vm4, %v2770_v22, %v473_v62 }
 0x135   : > { %v1015_v41 = vsel %vm991_vm11, %v984_v2, %v767_v63 }
 0x136   : > { %2427 = vmatmul.mubr.msk.bf16.vlgmr.msra.gmra.mrb[0].mxu1 %vm1049_vm12, %v1015_v41 }
 0x137   : > { %2430 = vmatprep.mubr.msk.bf16.mxu1 %vm2551_vm3, %v2542_v1  ;;  %v533_v8 = vpop.permute.xlu0 %532 }
 0x138   : > { %v569_v9 = vpop.permute.xlu1 %568  ;;  %v827_v12 = vsel %vm805_vm5, %v796_v10, %v533_v8 }
 0x139   : > { %v858_v13 = vsel %vm836_vm6, %v827_v12, %v569_v9 }
 0x13b   : > { %v477_v55 = vpop.permute.xlu0 %476 }
 0x13c   : > { %v615_v57 = vpop.permute.xlu1 %614  ;;  %v800_v0 = vsel %vm774_vm4, %v2815_v60, %v477_v55 }
 0x13d   : > { %v889_v17 = vsel %vm867_vm7, %v858_v13, %v615_v57 }
 0x13f   : > { %v537_v59 = vpop.permute.xlu0 %536 }
 0x140   : > { %v649_v50 = vpop.permute.xlu1 %648  ;;  %v831_v25 = vsel %vm805_vm5, %v800_v0, %v537_v59 }
 0x141   : > { %v920_v18 = vsel %vm898_vm8, %v889_v17, %v649_v50 }
 0x143   : > { %v573_v11 = vpop.permute.xlu0 %572 }
 0x144   : > { %v685_v7 = vpop.permute.xlu1 %684  ;;  %v862_v56 = vsel %vm836_vm6, %v831_v25, %v573_v11 }
 0x145   : > { %v951_v19 = vsel %vm929_vm9, %v920_v18, %v685_v7 }
 0x147   : > { %v619_v15 = vpop.permute.xlu0 %618 }
 0x148   : > { %v731_v16 = vpop.permute.xlu1 %730  ;;  %v893_v27 = vsel %vm867_vm7, %v862_v56, %v619_v15 }
 0x149   : > { %v982_v46 = vsel %vm960_vm10, %v951_v19, %v731_v16 }
 0x14b   : > { %v653_v20 = vpop.permute.xlu0 %652 }
 0x14c   : > { %v765_v23 = vpop.permute.xlu1 %764  ;;  %v924_v29 = vsel %vm898_vm8, %v893_v27, %v653_v20 }
 0x14d   : > { %v1013_v22 = vsel %vm991_vm11, %v982_v46, %v765_v23 }
 0x14e   : > { %2423 = vmatmul.mubr.msk.bf16.gmra.mrb[40].mxu0 %vm1049_vm12, %v1013_v22 }
 0x14f   : > { %v689_v58 = vpop.permute.xlu0 %688 }
 0x150   : > { %v769_v26 = vpop.permute.xlu1 %768  ;;  %v955_v4 = vsel %vm929_vm9, %v924_v29, %v689_v58 }
 0x153   : > { %v735_v30 = vpop.permute.xlu0 %734 }
 0x154   : > { %v539_v32 = vpop.permute.xlu1 %538  ;;  %v986_v31 = vsel %vm960_vm10, %v955_v4, %v735_v30 }
 0x155   : > { %v1017_v33 = vsel %vm991_vm11, %v986_v31, %v769_v26 }
 0x156   : > { %2431 = vmatmul.mubr.msk.bf16.gmra.mrb[4].mxu1 %vm1049_vm12, %v1017_v33 }
 0x157   : > { %v479_v60 = vpop.permute.xlu0 %478  ;;  %2434 = vmatprep.mubr.msk.bf16.mxu1 %vm2551_vm3, %v2542_v1 }
 0x158   : > { %v621_v34 = vpop.permute.xlu1 %620  ;;  %v802_v5 = vsel %vm774_vm4, %v2846_v24, %v479_v60 }
 0x159   : > { %v833_v21 = vsel %vm805_vm5, %v802_v5, %v539_v32 }
 0x15b   : > { %v575_v37 = vpop.permute.xlu0 %574 }
 0x15c   : > { %v691_v38 = vpop.permute.xlu1 %690  ;;  %v864_v49 = vsel %vm836_vm6, %v833_v21, %v575_v37 }
 0x15d   : > { %v895_v39 = vsel %vm867_vm7, %v864_v49, %v621_v34 }
 0x15f   : > { %v655_v6 = vpop.permute.xlu0 %654 }
 0x160   : > { %v771_v36 = vpop.permute.xlu1 %770  ;;  %v926_v28 = vsel %vm898_vm8, %v895_v39, %v655_v6 }
 0x161   : > { %v957_v42 = vsel %vm929_vm9, %v926_v28, %v691_v38 }
 0x163   : > { %v737_v43 = vpop.permute.xlu0 %736 }
 0x164   : > { %v541_v44 = vpop.permute.xlu1 %540  ;;  %v988_v45 = vsel %vm960_vm10, %v957_v42, %v737_v43 }
 0x165   : > { %v1019_v24 = vsel %vm991_vm11, %v988_v45, %v771_v36 }
 0x166   : > { %2435 = vmatmul.mubr.msk.bf16.gmra.mrb[8].mxu1 %vm1049_vm12, %v1019_v24 }
 0x167   : > { %v481_v14 = vpop.permute.xlu0 %480  ;;  %2438 = vmatprep.mubr.msk.bf16.mxu1 %vm2551_vm3, %v2542_v1  ;;  %vm1803_vm3 = vcmask 523264  }
 0x168   : > { %v623_v47 = vpop.permute.xlu1 %622  ;;  %v804_v51 = vsel %vm774_vm4, %v2975_v48, %v481_v14  ;;  %vm1871_vm4 = vcmask 588800  }
 0x169   : > { %v835_v52 = vsel %vm805_vm5, %v804_v51, %v541_v44 }
 0x16b   : > { %v577_v3 = vpop.permute.xlu0 %576 }
 0x16c   : > { %v866_v54 = vsel %vm836_vm6, %v835_v52, %v577_v3  ;;  %v693_v40 = vpop.permute.xlu1 %692 }
 0x16d   : > { %v897_v35 = vsel %vm867_vm7, %v866_v54, %v623_v47  ;;  %v1118_v61 = vpop.f32.mrb[0].mxu0 }
 0x16e   : > { %v1119_v2 = vadd.f32 %v3140_v53, %v1118_v61  ;;  %v2384_v1 = vpop.f32.mrb[1].mxu0 }
 0x16f   : > { %v1121_v62 = vpop.f32.mrb[2].mxu0  ;;  %v657_v63 = vpop.permute.xlu0 %656 }
 0x170   : > { %v1122_v48 = vadd.f32 %v3140_v53, %v1121_v62  ;;  %v928_v41 = vsel %vm898_vm8, %v897_v35, %v657_v63  ;;  %v2385_v8 = vpop.f32.mrb[3].mxu0  ;;  %v1236_v55 = vmax.f32 %v1119_v2, 0.0  ;;  %v773_v59 = vpop.permute.xlu1 %772 }
 0x171   : > { %v959_v9 = vsel %vm929_vm9, %v928_v41, %v693_v40 }
 0x172   : > { %v1237_v57 = vmax.f32 %v1122_v48, 0.0 }
 0x173   : > { %v739_v50 = vpop.permute.xlu0 %738 }
 0x174   : > { %v3148_v10 = vpack.c.bf16 %v1237_v57, %v1236_v55  ;;  %v990_v11 = vsel %vm960_vm10, %v959_v9, %v739_v50 }
 0x175   : > { %v1021_v7 = vsel %vm991_vm11, %v990_v11, %v773_v59 }
 0x176   : > { %2439 = vmatmul.mubr.msk.bf16.gmra.mrb[12].mxu1 %vm1049_vm12, %v1021_v7 }
 0x179   : > { %v1126_v12 = vpop.f32.mrb[4].mxu0 }
 0x17a   : > { %v1127_v13 = vadd.f32 %v3140_v53, %v1126_v12  ;;  %v2388_v15 = vpop.f32.mrb[5].mxu0 }
 0x17b   : > { %v1129_v16 = vpop.f32.mrb[6].mxu0 }
 0x17c   : > { %v1130_v17 = vadd.f32 %v3140_v53, %v1129_v16  ;;  %v2389_v18 = vpop.f32.mrb[7].mxu0  ;;  %v1238_v19 = vmax.f32 %v1127_v13, 0.0 }
 0x17e   : > { %v1239_v46 = vmax.f32 %v1130_v17, 0.0 }
 0x180   : > { %v3155_v20 = vpack.c.bf16 %v1239_v46, %v1238_v19 }
 0x189   : > { %v1134_v23 = vpop.f32.mrb[8].mxu0 }
 0x18a   : > { %v1135_v22 = vadd.f32 %v3140_v53, %v1134_v23  ;;  %v2392_v0 = vpop.f32.mrb[9].mxu0 }
 0x18b   : > { %v1137_v25 = vpop.f32.mrb[10].mxu0 }
 0x18c   : > { %v1138_v58 = vadd.f32 %v3140_v53, %v1137_v25  ;;  %v2393_v26 = vpop.f32.mrb[11].mxu0  ;;  %v1240_v56 = vmax.f32 %v1135_v22, 0.0 }
 0x18e   : > { %v1241_v27 = vmax.f32 %v1138_v58, 0.0 }
 0x190   : > { %v3159_v29 = vpack.c.bf16 %v1241_v27, %v1240_v56 }
 0x199   : > { %v1142_v4 = vpop.f32.mrb[12].mxu0 }
 0x19a   : > { %v1143_v30 = vadd.f32 %v3140_v53, %v1142_v4  ;;  %v2396_v32 = vpop.f32.mrb[13].mxu0 }
 0x19b   : > { %v1145_v31 = vpop.f32.mrb[14].mxu0 }
 0x19c   : > { %v1146_v33 = vadd.f32 %v3140_v53, %v1145_v31  ;;  %v2397_v60 = vpop.f32.mrb[15].mxu0  ;;  %v1242_v34 = vmax.f32 %v1143_v30, 0.0 }
 0x19e   : > { %v1243_v5 = vmax.f32 %v1146_v33, 0.0 }
 0x1a0   : > { %v3163_v21 = vpack.c.bf16 %v1243_v5, %v1242_v34 }
 0x1a9   : > { %v1150_v37 = vpop.f32.mrb[16].mxu0 }
 0x1aa   : > { %v1151_v38 = vadd.f32 %v3140_v53, %v1150_v37  ;;  %v2400_v49 = vpop.f32.mrb[17].mxu0 }
 0x1ab   : > { %v1153_v39 = vpop.f32.mrb[18].mxu0 }
 0x1ac   : > { %v1154_v6 = vadd.f32 %v3140_v53, %v1153_v39  ;;  %v2401_v36 = vpop.f32.mrb[19].mxu0  ;;  %v1244_v28 = vmax.f32 %v1151_v38, 0.0 }
 0x1ad   : > { %v1417_v36 = vrot.slane %v3148_v10, 1 }
 0x1ae   : > { %v1245_v42 = vmax.f32 %v1154_v6, 0.0  ;;  %v1418_v6 = vrot.slane %v3155_v20, 1 }
 0x1b0   : > { %v3167_v43 = vpack.c.bf16 %v1245_v42, %v1244_v28  ;;  %v1419_v28 = vsel %vm482_vm0, %v1417_v36, %v1418_v6 }
 0x1b9   : > { %v1158_v44 = vpop.f32.mrb[20].mxu0 }
 0x1ba   : > { %v1159_v45 = vadd.f32 %v3140_v53, %v1158_v44  ;;  %v2404_v24 = vpop.f32.mrb[21].mxu0 }
 0x1bb   : > { %v1161_v14 = vpop.f32.mrb[22].mxu0 }
 0x1bc   : > { %v1162_v47 = vadd.f32 %v3140_v53, %v1161_v14  ;;  %v2405_v51 = vpop.f32.mrb[23].mxu0  ;;  %v1246_v52 = vmax.f32 %v1159_v45, 0.0 }
 0x1be   : > { %v1247_v3 = vmax.f32 %v1162_v47, 0.0 }
 0x1c0   : > { %v3171_v54 = vpack.c.bf16 %v1247_v3, %v1246_v52 }
 0x1c9   : > { %v1166_v40 = vpop.f32.mrb[24].mxu0 }
 0x1ca   : > { %v1167_v35 = vadd.f32 %v3140_v53, %v1166_v40  ;;  %v2408_v61 = vpop.f32.mrb[25].mxu0 }
 0x1cb   : > { %v1169_v2 = vpop.f32.mrb[26].mxu0 }
 0x1cc   : > { %v1170_v1 = vadd.f32 %v3140_v53, %v1169_v2  ;;  %v2409_v62 = vpop.f32.mrb[27].mxu0  ;;  %v1248_v63 = vmax.f32 %v1167_v35, 0.0 }
 0x1ce   : > { %v1249_v48 = vmax.f32 %v1170_v1, 0.0 }
 0x1d0   : > { %v3175_v41 = vpack.c.bf16 %v1249_v48, %v1248_v63 }
 0x1d9   : > { %v1174_v8 = vpop.f32.mrb[28].mxu0 }
 0x1da   : > { %v1175_v9 = vadd.f32 %v3140_v53, %v1174_v8  ;;  %v2412_v55 = vpop.f32.mrb[29].mxu0 }
 0x1db   : > { %v1177_v57 = vpop.f32.mrb[30].mxu0 }
 0x1dc   : > { %v1178_v59 = vadd.f32 %v3140_v53, %v1177_v57  ;;  %v2413_v50 = vpop.f32.mrb[31].mxu0  ;;  %v1250_v11 = vmax.f32 %v1175_v9, 0.0 }
 0x1dd   : > { %v1283_v50 = vshll.u32 %v3148_v10, 16 }
 0x1de   : > { %v1251_v7 = vmax.f32 %v1178_v59, 0.0 }
 0x1e0   : > { %v3179_v12 = vpack.c.bf16 %v1251_v7, %v1250_v11 }
 0x1e9   : > { %v1182_v13 = vpop.f32.mrb[32].mxu0 }
 0x1ea   : > { %v1183_v15 = vadd.f32 %v3140_v53, %v1182_v13  ;;  %v2416_v16 = vpop.f32.mrb[33].mxu0  ;;  %v1288_v13 = vshll.u32 %v3155_v20, 16 }
 0x1eb   : > { %v1185_v17 = vpop.f32.mrb[34].mxu0 }
 0x1ec   : > { %v1186_v18 = vadd.f32 %v3140_v53, %v1185_v17  ;;  %v2417_v19 = vpop.f32.mrb[35].mxu0  ;;  %v1252_v46 = vmax.f32 %v1183_v15, 0.0  ;;  %v1285_v17 = vrot.slane %v1283_v50, 1 }
 0x1ed   : > { %v1281_v19 = vshrl.u32 %v3148_v10, 16 }
 0x1ee   : > { %v1253_v23 = vmax.f32 %v1186_v18, 0.0 }
 0x1f0   : > { %v3183_v22 = vpack.c.bf16 %v1253_v23, %v1252_v46  ;;  %v1290_v46 = vrot.slane %v1288_v13, 1 }
 0x201   : > { %v1190_v0 = vpop.f32.mrb[36].mxu0 }
 0x202   : > { %v1191_v25 = vadd.f32 %v3140_v53, %v1190_v0  ;;  %v2420_v58 = vpop.f32.mrb[37].mxu0 }
 0x203   : > { %v1193_v26 = vpop.f32.mrb[38].mxu0 }
 0x204   : > { %v1194_v56 = vadd.f32 %v3140_v53, %v1193_v26  ;;  %v2421_v27 = vpop.f32.mrb[39].mxu0  ;;  %v1254_v4 = vmax.f32 %v1191_v25, 0.0  ;;  %v1286_v26 = vor.u32 %v1285_v17, %v1281_v19  ;;  %v2531_v17 = vld [vmem:[%s3652_s3 + $0x10] sm:$0xff]  }
 0x206   : > { %v1255_v30 = vmax.f32 %v1194_v56, 0.0 }
 0x208   : > { %v3187_v32 = vpack.c.bf16 %v1255_v30, %v1254_v4  ;;  %v1291_v30 = vsel %vm332_vm1, %v1286_v26, %v1290_v46  ;;  %v1424_v26 = vrot.slane %v3167_v43, 1 }
 0x209   : > { %v1206_v31 = vpop.f32.mrb[0].mxu1 }
 0x20a   : > { %v1207_v33 = vadd.f32 %v3140_v53, %v1206_v31  ;;  %v2428_v60 = vpop.f32.mrb[1].mxu1 }
 0x20b   : > { %v1209_v34 = vpop.f32.mrb[2].mxu1 }
 0x20c   : > { %v1210_v5 = vadd.f32 %v3140_v53, %v1209_v34  ;;  %v2429_v37 = vpop.f32.mrb[3].mxu1  ;;  %v1258_v38 = vmax.f32 %v1207_v33, 0.0  ;;  %v1420_v34 = vrot.slane %v3159_v29, 1 }
 0x20e   : > { %v1259_v49 = vmax.f32 %v1210_v5, 0.0  ;;  %v1296_v5 = vshll.u32 %v3159_v29, 16  ;;  %v1421_v37 = vsel %vm482_vm0, %v1418_v6, %v1420_v34 }
 0x210   : > { %v3191_v39 = vpack.c.bf16 %v1259_v49, %v1258_v38  ;;  %v1292_v49 = vshrl.u32 %v3155_v20, 16  ;;  %v1298_v36 = vrot.slane %v1296_v5, 1 }
 0x212   : > { %1486 = vrot.lane.b32.xlu0 %v3191_v39, %s2545_s28  ;;  %1567 = vrot.lane.b32.xlu1 %v3191_v39, %s2552_s15  ;;  %v1368_v8 = vshll.u32 %v3191_v39, 16  ;;  %v1438_v55 = vrot.slane %v3191_v39, 1  ;;  %v1372_v15 = vshrl.u32 %v3191_v39, 16  ;;  %v1294_v6 = vor.u32 %v1292_v49, %v1290_v46  ;;  %v2532_v46 = vld [vmem:[%s3652_s3 + $0x18] sm:$0xff]  }
 0x214   : > { %v3220_v11 = vrot.slane %v1368_v8, 1 }
 0x216   : > { %1466 = vrot.lane.b32.xlu0 %v3155_v20, %s2545_s28  ;;  %v1374_v18 = vor.u32 %v1372_v15, %v3220_v11  ;;  %v1304_v15 = vshll.u32 %v3163_v21, 16 }
 0x218   : > { %v1306_v19 = vrot.slane %v1304_v15, 1  ;;  %v1344_v15 = vshll.u32 %v3183_v22, 16 }
 0x21a   : > { %1442 = vrot.lane.b32.xlu0 %v1419_v28, %s2550_s10 }
 0x221   : > { %v1198_v42 = vpop.f32.mrb[40].mxu0 }
 0x222   : > { %v1199_v44 = vadd.f32 %v3140_v53, %v1198_v42  ;;  %v2424_v45 = vpop.f32.mrb[41].mxu0 }
 0x223   : > { %v1201_v24 = vpop.f32.mrb[42].mxu0 }
 0x224   : > { %v1202_v14 = vadd.f32 %v3140_v53, %v1201_v24  ;;  %v2425_v47 = vpop.f32.mrb[43].mxu0  ;;  %v1256_v51 = vmax.f32 %v1199_v44, 0.0 }
 0x226   : > { %v1257_v52 = vmax.f32 %v1202_v14, 0.0 }
 0x228   : > { %v3207_v3 = vpack.c.bf16 %v1257_v52, %v1256_v51  ;;  %v1299_v51 = vsel %vm332_vm1, %v1294_v6, %v1298_v36  ;;  %v1328_v6 = vshll.u32 %v3175_v41, 16 }
 0x229   : > { %v1214_v40 = vpop.f32.mrb[4].mxu1 }
 0x22a   : > { %v1215_v35 = vadd.f32 %v3140_v53, %v1214_v40  ;;  %v2432_v61 = vpop.f32.mrb[5].mxu1 }
 0x22b   : > { %v1217_v2 = vpop.f32.mrb[6].mxu1  ;;  %v2529_v61 = vld [vmem:[%s3652_s3] sm:$0xff]  }
 0x22c   : > { %v1218_v1 = vadd.f32 %v3140_v53, %v1217_v2  ;;  %v2433_v62 = vpop.f32.mrb[7].mxu1  ;;  %v1260_v63 = vmax.f32 %v1215_v35, 0.0  ;;  %2442 = vmatprep.subr.bf16.mxu1 %v2529_v61 }
 0x22d   : > { %2443 = vmatpush3.bf16.msra.mxu1 %v2529_v61 }
 0x22e   : > { %v1261_v48 = vmax.f32 %v1218_v1, 0.0 }
 0x230   : > { %v3212_v9 = vpack.c.bf16 %v1261_v48, %v1260_v63  ;;  %v1422_v63 = vrot.slane %v3163_v21, 1 }
 0x232   : > { %1488 = vrot.lane.b32.xlu1 %v3212_v9, %s2545_s28  ;;  %v1440_v57 = vrot.slane %v3212_v9, 1  ;;  %v1376_v59 = vshll.u32 %v3212_v9, 16  ;;  %v1490_v40 = vshrl.u32 %v3212_v9, 16  ;;  %v1423_v13 = vsel %vm482_vm0, %v1420_v34, %v1422_v63 }
 0x233   : > { %v1426_v34 = vrot.slane %v3171_v54, 1 }
 0x234   : > { %v1441_v7 = vsel %vm482_vm0, %v1438_v55, %v1440_v57  ;;  %v1378_v16 = vrot.slane %v1376_v59, 1 }
 0x235   : > { %1626 = vrot.lane.b32.xlu0 %v1441_v7, %s2553_s16  ;;  %v1427_v5 = vsel %vm482_vm0, %v1424_v26, %v1426_v34 }
 0x236   : > { %1464 = vrot.lane.b32.xlu1 %v1441_v7, %s2550_s10  ;;  %v1379_v0 = vsel %vm332_vm1, %v1374_v18, %v1378_v16  ;;  %v1492_v2 = vor.u32 %v1490_v40, %v1378_v16  ;;  %v1300_v18 = vshrl.u32 %v3159_v29, 16 }
 0x239   : > { %1545 = vrot.lane.b32.xlu0 %v1441_v7, %s2554_s17  ;;  %v1222_v23 = vpop.f32.mrb[8].mxu1 }
 0x23a   : > { %v1223_v25 = vadd.f32 %v3140_v53, %v1222_v23  ;;  %1599 = vrot.lane.b32.xlu1 %v1379_v0, %s2555_s20  ;;  %v2436_v58 = vpop.f32.mrb[9].mxu1  ;;  %v1302_v23 = vor.u32 %v1300_v18, %v1298_v36 }
 0x23b   : > { %v1225_v56 = vpop.f32.mrb[10].mxu1 }
 0x23c   : > { %v1226_v27 = vadd.f32 %v3140_v53, %v1225_v56  ;;  %v2437_v4 = vpop.f32.mrb[11].mxu1  ;;  %v1262_v31 = vmax.f32 %v1223_v25, 0.0  ;;  %v2533_v25 = vld [vmem:[%s3652_s3 + $0x20] ss:$0 sps:$4 sm:$0xff]   ;;  %v1425_v56 = vsel %vm482_vm0, %v1422_v63, %v1424_v26 }
 0x23d   : > { %1380 = vrot.lane.b32.xlu0 %v1291_v30, %s2544_s27  ;;  %v1898_v58 = vsel %vm1896_vm13, %v2533_v25, 0  ;;  %v1308_v4 = vshrl.u32 %v3163_v21, 16 }
 0x23e   : > { %v1263_v33 = vmax.f32 %v1226_v27, 0.0  ;;  %1402 = vrot.lane.b32.xlu1 %v1379_v0, %s2544_s27  ;;  %v1312_v27 = vshll.u32 %v3167_v43, 16 }
 0x240   : > { %v3239_v60 = vpack.c.bf16 %v1263_v33, %v1262_v31  ;;  %v1314_v30 = vrot.slane %v1312_v27, 1  ;;  %v1310_v31 = vor.u32 %v1308_v4, %v1306_v19  ;;  %v1434_v27 = vrot.slane %v3187_v32, 1 }
 0x241   : > { %1518 = vrot.lane.b32.xlu0 %v1379_v0, %s2547_s30  ;;  %v1307_v0 = vsel %vm332_vm1, %v1302_v23, %v1306_v19  ;;  %v1340_v19 = vshrl.u32 %v3179_v12, 16 }
 0x242   : > { %1468 = vrot.lane.b32.xlu1 %v3159_v29, %s2545_s28  ;;  %v1523_v38 = vrot.slane %v3239_v60, 1  ;;  %v1494_v44 = vshll.u32 %v3239_v60, 16  ;;  %v1573_v48 = vshrl.u32 %v3239_v60, 16  ;;  %v1315_v33 = vsel %vm332_vm1, %v1310_v31, %v1314_v30 }
 0x244   : > { %v3256_v42 = vsel %vm482_vm0, %v1440_v57, %v1523_v38  ;;  %v1496_v35 = vrot.slane %v1494_v44, 1  ;;  %v2530_v57 = vld [vmem:[%s3652_s3 + $0x8] sm:$0xff]   ;;  %v1428_v44 = vrot.slane %v3175_v41, 1 }
 0x245   : > { %1549 = vrot.lane.b32.xlu0 %v3159_v29, %s2552_s15  ;;  %2444 = vmatprep.subr.bf16.mxu1 %v2530_v57 }
 0x246   : > { %1444 = vrot.lane.b32.xlu1 %v1421_v37, %s2550_s10  ;;  %v3274_v8 = vsel %vm332_vm1, %v1492_v2, %v1496_v35  ;;  %v1575_v50 = vor.u32 %v1573_v48, %v1496_v35  ;;  %2445 = vmatpush3.bf16.msra.mxu1 %v2530_v57  ;;  %v1336_v35 = vshll.u32 %v3179_v12, 16  ;;  %v1432_v57 = vrot.slane %v3183_v22, 1 }
 0x247   : > { %2446 = vmatprep.subr.bf16.mxu1 %v2531_v17 }
 0x248   : > { %v1338_v2 = vrot.slane %v1336_v35, 1 }
 0x249   : > { %1525 = vrot.lane.b32.xlu0 %v1421_v37, %s2554_s17  ;;  %v1230_v28 = vpop.f32.mrb[12].mxu1  ;;  %v1320_v37 = vshll.u32 %v3171_v54, 16 }
 0x24a   : > { %v1231_v45 = vadd.f32 %v3140_v53, %v1230_v28  ;;  %1547 = vrot.lane.b32.xlu1 %v3256_v42, %s2554_s17  ;;  %v2440_v24 = vpop.f32.mrb[13].mxu1  ;;  %2447 = vmatpush3.bf16.msra.mxu1 %v2531_v17  ;;  %v1342_v23 = vor.u32 %v1340_v19, %v1338_v2 }
 0x24b   : > { %v1233_v14 = vpop.f32.mrb[14].mxu1  ;;  %2448 = vmatprep.subr.bf16.mxu1 %v2532_v46  ;;  %v1322_v49 = vrot.slane %v1320_v37, 1  ;;  %v1324_v24 = vshrl.u32 %v3171_v54, 16  ;;  %v1352_v37 = vshll.u32 %v3187_v32, 16 }
 0x24c   : > { %v1264_v47 = vmax.f32 %v1231_v45, 0.0  ;;  %v2441_v52 = vpop.f32.mrb[15].mxu1  ;;  %v1429_v45 = vsel %vm482_vm0, %v1426_v34, %v1428_v44  ;;  %v1330_v14 = vrot.slane %v1328_v6, 1 }
 0x24d   : > { %1498 = vrot.lane.b32.xlu0 %v1299_v51, %s2547_s30  ;;  %v1430_v52 = vrot.slane %v3179_v12, 1 }
 0x24e   : > { %v1279_v53 = vpack.c.bf16 %v1264_v47, %v1264_v47  ;;  %1382 = vrot.lane.b32.xlu1 %v1299_v51, %s2544_s27  ;;  %2449 = vmatpush3.bf16.msra.mxu1 %v2532_v46  ;;  %v1326_v47 = vor.u32 %v1324_v24, %v1322_v49  ;;  %v1346_v46 = vrot.slane %v1344_v15, 1 }
 0x24f   : > { %2482 = vmatprep.subr.msk.bf16.mxu1 %vm1896_vm13, %v2533_v25  ;;  %v1431_v40 = vsel %vm482_vm0, %v1428_v44, %v1430_v52 }
 0x250   : > { %v1577_v1 = vshll.u32 %v1279_v53, 16  ;;  %v1606_v62 = vrot.slane %v1279_v53, 1  ;;  %v1331_v51 = vsel %vm332_vm1, %v1326_v47, %v1330_v14  ;;  %v1332_v53 = vshrl.u32 %v3175_v41, 16 }
 0x251   : > { %1470 = vrot.lane.b32.xlu0 %v3163_v21, %s2545_s28 }
 0x252   : > { %v1579_v59 = vrot.slane %v1577_v1, 1  ;;  %1520 = vrot.lane.b32.xlu1 %v3274_v8, %s2547_s30  ;;  %v3282_v7 = vsel %vm482_vm0, %v1523_v38, %v1606_v62  ;;  %2451 = vmatpush3.bf16.msra.mxu1 %v1898_v58  ;;  %v1316_v38 = vshrl.u32 %v3167_v43, 16  ;;  %v1334_v1 = vor.u32 %v1332_v53, %v1330_v14 }
 0x253   : > { %v1347_v58 = vsel %vm332_vm1, %v1342_v23, %v1346_v46 }
 0x254   : > { %v3287_v16 = vsel %vm332_vm1, %v1575_v50, %v1579_v59  ;;  %v1318_v36 = vor.u32 %v1316_v38, %v1314_v30  ;;  %v1339_v62 = vsel %vm332_vm1, %v1334_v1, %v1338_v2 }
 0x255   : > { %1608 = vrot.lane.b32.xlu0 %v1423_v13, %s2553_s16 }
 0x256   : > { %1551 = vrot.lane.b32.xlu1 %v3163_v21, %s2552_s15  ;;  %v1323_v28 = vsel %vm332_vm1, %v1318_v36, %v1322_v49  ;;  %v1348_v36 = vshrl.u32 %v3183_v22, 16 }
 0x258   : > { %v1350_v44 = vor.u32 %v1348_v36, %v1346_v46 }
 0x259   : > { %1446 = vrot.lane.b32.xlu0 %v1423_v13, %s2550_s10 }
 0x25a   : > { %1527 = vrot.lane.b32.xlu1 %v1423_v13, %s2554_s17  ;;  %v1433_v13 = vsel %vm482_vm0, %v1430_v52, %v1432_v57 }
 0x25d   : > { %1581 = vrot.lane.b32.xlu0 %v1307_v0, %s2555_s20 }
 0x25e   : > { %1500 = vrot.lane.b32.xlu1 %v1307_v0, %s2547_s30 }
 0x261   : > { %1553 = vrot.lane.b32.xlu0 %v3167_v43, %s2552_s15 }
 0x262   : > { %1384 = vrot.lane.b32.xlu1 %v1307_v0, %s2544_s27 }
 0x265   : > { %1610 = vrot.lane.b32.xlu0 %v1425_v56, %s2553_s16 }
 0x266   : > { %1472 = vrot.lane.b32.xlu1 %v3167_v43, %s2545_s28 }
 0x269   : > { %1529 = vrot.lane.b32.xlu0 %v1425_v56, %s2554_s17 }
 0x26a   : > { %1448 = vrot.lane.b32.xlu1 %v1425_v56, %s2550_s10 }
 0x26d   : > { %1502 = vrot.lane.b32.xlu0 %v1315_v33, %s2547_s30 }
 0x26e   : > { %1583 = vrot.lane.b32.xlu1 %v1315_v33, %s2555_s20 }
 0x271   : > { %1474 = vrot.lane.b32.xlu0 %v3171_v54, %s2545_s28 }
 0x272   : > { %1386 = vrot.lane.b32.xlu1 %v1315_v33, %s2544_s27 }
 0x275   : > { %1612 = vrot.lane.b32.xlu0 %v1427_v5, %s2553_s16 }
 0x276   : > { %1555 = vrot.lane.b32.xlu1 %v3171_v54, %s2552_s15 }
 0x279   : > { %1450 = vrot.lane.b32.xlu0 %v1427_v5, %s2550_s10 }
 0x27a   : > { %1531 = vrot.lane.b32.xlu1 %v1427_v5, %s2554_s17  ;;  %v1435_v5 = vsel %vm482_vm0, %v1432_v57, %v1434_v27 }
 0x27d   : > { %1585 = vrot.lane.b32.xlu0 %v1323_v28, %s2555_s20 }
 0x27e   : > { %1504 = vrot.lane.b32.xlu1 %v1323_v28, %s2547_s30 }
 0x281   : > { %1557 = vrot.lane.b32.xlu0 %v3175_v41, %s2552_s15 }
 0x282   : > { %1388 = vrot.lane.b32.xlu1 %v1323_v28, %s2544_s27  ;;  %v1354_v28 = vrot.slane %v1352_v37, 1 }
 0x284   : > { %v3361_v61 = vpop.permute.xlu0 %1486  ;;  %v3371_v48 = vpop.permute.xlu1 %1567  ;;  %v1355_v24 = vsel %vm332_vm1, %v1350_v44, %v1354_v28 }
 0x285   : > { %1614 = vrot.lane.b32.xlu0 %v1429_v45, %s2553_s16 }
 0x286   : > { %1476 = vrot.lane.b32.xlu1 %v3175_v41, %s2545_s28 }
 0x288   : > { %v3367_v63 = vpop.permute.xlu0 %1466 }
 0x289   : > { %1533 = vrot.lane.b32.xlu0 %v1429_v45, %s2554_s17 }
 0x28a   : > { %1452 = vrot.lane.b32.xlu1 %v1429_v45, %s2550_s10 }
 0x28c   : > { %v1443_v59 = vpop.permute.xlu0 %1442 }
 0x28d   : > { %1506 = vrot.lane.b32.xlu0 %v1331_v51, %s2547_s30 }
 0x28e   : > { %1587 = vrot.lane.b32.xlu1 %v1331_v51, %s2555_s20 }
 0x291   : > { %1478 = vrot.lane.b32.xlu0 %v3179_v12, %s2545_s28 }
 0x292   : > { %1390 = vrot.lane.b32.xlu1 %v1331_v51, %s2544_s27  ;;  %v1436_v51 = vrot.slane %v3207_v3, 1 }
 0x294   : > { %v1437_v53 = vsel %vm482_vm0, %v1434_v27, %v1436_v51  ;;  %v1439_v46 = vsel %vm482_vm0, %v1436_v51, %v1438_v55 }
 0x295   : > { %1616 = vrot.lane.b32.xlu0 %v1431_v40, %s2553_s16 }
 0x296   : > { %1559 = vrot.lane.b32.xlu1 %v3179_v12, %s2552_s15 }
 0x299   : > { %1454 = vrot.lane.b32.xlu0 %v1431_v40, %s2550_s10 }
 0x29a   : > { %1535 = vrot.lane.b32.xlu1 %v1431_v40, %s2554_s17 }
 0x29d   : > { %1589 = vrot.lane.b32.xlu0 %v1339_v62, %s2555_s20 }
 0x29e   : > { %1508 = vrot.lane.b32.xlu1 %v1339_v62, %s2547_s30 }
 0x2a1   : > { %1561 = vrot.lane.b32.xlu0 %v3183_v22, %s2552_s15 }
 0x2a2   : > { %1392 = vrot.lane.b32.xlu1 %v1339_v62, %s2544_s27 }
 0x2a4   : > { %v1489_v50 = vpop.permute.xlu1 %1488 }
 0x2a5   : > { %1618 = vrot.lane.b32.xlu0 %v1433_v13, %s2553_s16 }
 0x2a6   : > { %1480 = vrot.lane.b32.xlu1 %v3183_v22, %s2545_s28 }
 0x2a7   : > { %v3382_v17 = vpop.permute.xlu0 %1626 }
 0x2a8   : > { %v1465_v18 = vpop.permute.xlu1 %1464 }
 0x2a9   : > { %1537 = vrot.lane.b32.xlu0 %v1433_v13, %s2554_s17 }
 0x2aa   : > { %1456 = vrot.lane.b32.xlu1 %v1433_v13, %s2550_s10 }
 0x2ab   : > { %v3387_v0 = vpop.permute.xlu0 %1545 }
 0x2ac   : > { %v3389_v25 = vpop.permute.xlu1 %1599 }
 0x2ad   : > { %1510 = vrot.lane.b32.xlu0 %v1347_v58, %s2547_s30 }
 0x2ae   : > { %1591 = vrot.lane.b32.xlu1 %v1347_v58, %s2555_s20 }
 0x2af   : > { %v1381_v26 = vpop.permute.xlu0 %1380 }
 0x2b0   : > { %v1403_v56 = vpop.permute.xlu1 %1402  ;;  %v1633_v52 = vsel %vm805_vm5, %v3148_v10, %v1381_v26 }
 0x2b1   : > { %v1655_v4 = vsel %vm805_vm5, %v3191_v39, %v1403_v56  ;;  %1482 = vrot.lane.b32.xlu0 %v3187_v32, %s2545_s28  ;;  %v1657_v2 = vsel %vm867_vm7, %v1633_v52, %v1443_v59  ;;  %v1360_v59 = vshll.u32 %v3207_v3, 16 }
 0x2b2   : > { %v1679_v30 = vsel %vm867_vm7, %v1655_v4, %v1465_v18  ;;  %1394 = vrot.lane.b32.xlu1 %v1347_v58, %s2544_s27  ;;  %v1681_v57 = vsel %vm929_vm9, %v1657_v2, %v3367_v63  ;;  %v1356_v63 = vshrl.u32 %v3187_v32, 16 }
 0x2b3   : > { %v3401_v31 = vpop.permute.xlu0 %1518  ;;  %v1703_v33 = vsel %vm929_vm9, %v1679_v30, %v1489_v50  ;;  %v1362_v23 = vrot.slane %v1360_v59, 1  ;;  %v1364_v30 = vshrl.u32 %v3207_v3, 16 }
 0x2b4   : > { %v3404_v34 = vpop.permute.xlu1 %1468  ;;  %v1358_v56 = vor.u32 %v1356_v63, %v1354_v28 }
 0x2b5   : > { %1620 = vrot.lane.b32.xlu0 %v1435_v5, %s2553_s16 }
 0x2b6   : > { %1563 = vrot.lane.b32.xlu1 %v3187_v32, %s2552_s15  ;;  %v1363_v55 = vsel %vm332_vm1, %v1358_v56, %v1362_v23 }
 0x2b7   : > { %v1550_v38 = vpop.permute.xlu0 %1549 }
 0x2b8   : > { %v1445_v49 = vpop.permute.xlu1 %1444 }
 0x2b9   : > { %1458 = vrot.lane.b32.xlu0 %v1435_v5, %s2550_s10 }
 0x2ba   : > { %1539 = vrot.lane.b32.xlu1 %v1435_v5, %s2554_s17 }
 0x2bb   : > { %v1526_v45 = vpop.permute.xlu0 %1525 }
 0x2bc   : > { %v1548_v6 = vpop.permute.xlu1 %1547 }
 0x2bd   : > { %1593 = vrot.lane.b32.xlu0 %v1355_v24, %s2555_s20 }
 0x2be   : > { %1512 = vrot.lane.b32.xlu1 %v1355_v24, %s2547_s30 }
 0x2bf   : > { %v1499_v14 = vpop.permute.xlu0 %1498 }
 0x2c0   : > { %v1383_v47 = vpop.permute.xlu1 %1382  ;;  %v1705_v13 = vsel %vm991_vm11, %v1681_v57, %v1499_v14 }
 0x2c1   : > { %1565 = vrot.lane.b32.xlu0 %v3207_v3, %s2552_s15  ;;  %v1730_v18 = vsel %vm1728_vm14, %v1705_v13, %v1526_v45 }
 0x2c2   : > { %1396 = vrot.lane.b32.xlu1 %v1355_v24, %s2544_s27  ;;  %v1755_v58 = vsel %vm1753_vm15, %v1730_v18, %v1550_v38  ;;  %v1366_v38 = vor.u32 %v1364_v30, %v1362_v23 }
 0x2c3   : > { %v3423_v40 = vpop.permute.xlu0 %1470 }
 0x2c4   : > { %v1521_v35 = vpop.permute.xlu1 %1520  ;;  %v1371_v45 = vsel %vm332_vm1, %v1366_v38, %v3220_v11 }
 0x2c5   : > { %v1727_v1 = vsel %vm991_vm11, %v1703_v33, %v1521_v35  ;;  %1622 = vrot.lane.b32.xlu0 %v1437_v53, %s2553_s16  ;;  %v1635_v33 = vsel %vm805_vm5, %v3155_v20, %v1383_v47 }
 0x2c6   : > { %1484 = vrot.lane.b32.xlu1 %v3207_v3, %s2545_s28  ;;  %v3432_v62 = vsel %vm1728_vm14, %v1727_v1, %v1548_v6  ;;  %v1659_v36 = vsel %vm867_vm7, %v1635_v33, %v1445_v49 }
 0x2c7   : > { %v1609_v10 = vpop.permute.xlu0 %1608  ;;  %v1683_v6 = vsel %vm929_vm9, %v1659_v36, %v3404_v34 }
 0x2c8   : > { %v1552_v50 = vpop.permute.xlu1 %1551 }
 0x2c9   : > { %1541 = vrot.lane.b32.xlu0 %v1437_v53, %s2554_s17 }
 0x2ca   : > { %1460 = vrot.lane.b32.xlu1 %v1437_v53, %s2550_s10 }
 0x2cb   : > { %v1447_v15 = vpop.permute.xlu0 %1446 }
 0x2cc   : > { %v1528_v19 = vpop.permute.xlu1 %1527 }
 0x2cd   : > { %1624 = vrot.lane.b32.xlu0 %v1439_v46, %s2553_s16 }
 0x2ce   : > { %1543 = vrot.lane.b32.xlu1 %v1439_v46, %s2554_s17 }
 0x2cf   : > { %v1582_v26 = vpop.permute.xlu0 %1581 }
 0x2d0   : > { %v1780_v27 = vsel %vm1778_vm2, %v1755_v58, %v1582_v26  ;;  %v1501_v39 = vpop.permute.xlu1 %1500 }
 0x2d1   : > { %1462 = vrot.lane.b32.xlu0 %v1439_v46, %s2550_s10  ;;  %v1805_v4 = vsel %vm1803_vm3, %v1780_v27, %v1609_v10  ;;  %v1707_v20 = vsel %vm991_vm11, %v1683_v6, %v1501_v39 }
 0x2d2   : > { %1595 = vrot.lane.b32.xlu1 %v1363_v55, %s2555_s20  ;;  %2452 = vmatprep.mubr.msk.bf16.mxu1 %vm1871_vm4, %v1805_v4  ;;  %v1732_v49 = vsel %vm1728_vm14, %v1707_v20, %v1528_v19 }
 0x2d3   : > { %v1554_v5 = vpop.permute.xlu0 %1553  ;;  %v1757_v47 = vsel %vm1753_vm15, %v1732_v49, %v1552_v50 }
 0x2d4   : > { %v1385_v37 = vpop.permute.xlu1 %1384 }
 0x2d5   : > { %1514 = vrot.lane.b32.xlu0 %v1363_v55, %s2547_s30  ;;  %v1637_v52 = vsel %vm805_vm5, %v3159_v29, %v1385_v37 }
 0x2d6   : > { %1398 = vrot.lane.b32.xlu1 %v1363_v55, %s2544_s27  ;;  %v1661_v53 = vsel %vm867_vm7, %v1637_v52, %v1447_v15 }
 0x2d7   : > { %v1611_v28 = vpop.permute.xlu0 %1610  ;;  %v1685_v29 = vsel %vm929_vm9, %v1661_v53, %v3423_v40 }
 0x2d8   : > { %v1473_v44 = vpop.permute.xlu1 %1472 }
 0x2d9   : > { %1597 = vrot.lane.b32.xlu0 %v1371_v45, %s2555_s20 }
 0x2da   : > { %1516 = vrot.lane.b32.xlu1 %v1371_v45, %s2547_s30  ;;  %s2484_s30 = smul.u32 96, %s3656_s19 }
 0x2db   : > { %v1530_v24 = vpop.permute.xlu0 %1529 }
 0x2dc   : > { %v1449_v14 = vpop.permute.xlu1 %1448  ;;  %s3599_s11 = scalar_lea.vmem %s3654_s5, %s2484_s30 }
 0x2dd   : > { %1569 = vrot.lane.b32.xlu0 %v3212_v9, %s2552_s15 }
 0x2de   : > { %1571 = vrot.lane.b32.xlu1 %v3239_v60, %s2552_s15 }
 0x2df   : > { %v1503_v11 = vpop.permute.xlu0 %1502 }
 0x2e0   : > { %v1584_v34 = vpop.permute.xlu1 %1583  ;;  %v1709_v1 = vsel %vm991_vm11, %v1685_v29, %v1503_v11 }
 0x2e1   : > { %v1782_v51 = vsel %vm1778_vm2, %v1757_v47, %v1584_v34  ;;  %1601 = vrot.lane.b32.xlu0 %v3274_v8, %s2555_s20  ;;  %v1734_v57 = vsel %vm1728_vm14, %v1709_v1, %v1530_v24 }
 0x2e2   : > { %v1807_v35 = vsel %vm1803_vm3, %v1782_v51, %v1611_v28  ;;  %1400 = vrot.lane.b32.xlu1 %v1371_v45, %s2544_s27  ;;  %v1759_v13 = vsel %vm1753_vm15, %v1734_v57, %v1554_v5 }
 0x2e3   : > { %2453 = vmatmul.mubr.msk.bf16.vlgmr.msra.gmra.mrb[16].mxu1 %vm1871_vm4, %v1807_v35  ;;  %v1475_v9 = vpop.permute.xlu0 %1474 }
 0x2e4   : > { %v1387_v60 = vpop.permute.xlu1 %1386 }
 0x2e5   : > { %1628 = vrot.lane.b32.xlu0 %v3256_v42, %s2553_s16  ;;  %v1639_v40 = vsel %vm805_vm5, %v3163_v21, %v1387_v60 }
 0x2e6   : > { %1603 = vrot.lane.b32.xlu1 %v3287_v16, %s2555_s20 }
 0x2e7   : > { %v1613_v8 = vpop.permute.xlu0 %1612 }
 0x2e8   : > { %v1556_v2 = vpop.permute.xlu1 %1555 }
 0x2ea   : > { %1630 = vrot.lane.b32.xlu1 %v3282_v7, %s2553_s16  ;;  %v1663_v7 = vsel %vm867_vm7, %v1639_v40, %v1449_v14 }
 0x2eb   : > { %v1451_v10 = vpop.permute.xlu0 %1450  ;;  %v1687_v23 = vsel %vm929_vm9, %v1663_v7, %v1473_v44 }
 0x2ec   : > { %v1532_v50 = vpop.permute.xlu1 %1531 }
 0x2ef   : > { %v1586_v42 = vpop.permute.xlu0 %1585 }
 0x2f0   : > { %v1784_v59 = vsel %vm1778_vm2, %v1759_v13, %v1586_v42  ;;  %v1505_v16 = vpop.permute.xlu1 %1504 }
 0x2f1   : > { %v1809_v15 = vsel %vm1803_vm3, %v1784_v59, %v1613_v8  ;;  %v1711_v58 = vsel %vm991_vm11, %v1687_v23, %v1505_v16 }
 0x2f2   : > { %2456 = vmatprep.mubr.msk.bf16.mxu1 %vm1871_vm4, %v1809_v15  ;;  %v1736_v27 = vsel %vm1728_vm14, %v1711_v58, %v1532_v50 }
 0x2f3   : > { %v1558_v18 = vpop.permute.xlu0 %1557  ;;  %v1761_v55 = vsel %vm1753_vm15, %v1736_v27, %v1556_v2 }
 0x2f4   : > { %v1389_v19 = vpop.permute.xlu1 %1388 }
 0x2f5   : > { %v1641_v30 = vsel %vm805_vm5, %v3167_v43, %v1389_v19 }
 0x2f6   : > { %v1665_v38 = vsel %vm867_vm7, %v1641_v30, %v1451_v10 }
 0x2f7   : > { %v1615_v46 = vpop.permute.xlu0 %1614  ;;  %v1689_v28 = vsel %vm929_vm9, %v1665_v38, %v1475_v9 }
 0x2f8   : > { %v1477_v63 = vpop.permute.xlu1 %1476 }
 0x2fb   : > { %v1534_v26 = vpop.permute.xlu0 %1533 }
 0x2fc   : > { %v1453_v56 = vpop.permute.xlu1 %1452 }
 0x2ff   : > { %v1507_v39 = vpop.permute.xlu0 %1506 }
 0x300   : > { %v1588_v4 = vpop.permute.xlu1 %1587  ;;  %v1713_v45 = vsel %vm991_vm11, %v1689_v28, %v1507_v39 }
 0x301   : > { %v1786_v21 = vsel %vm1778_vm2, %v1761_v55, %v1588_v4  ;;  %v1738_v20 = vsel %vm1728_vm14, %v1713_v45, %v1534_v26 }
 0x302   : > { %v1811_v33 = vsel %vm1803_vm3, %v1786_v21, %v1615_v46  ;;  %v1763_v43 = vsel %vm1753_vm15, %v1738_v20, %v1558_v18 }
 0x303   : > { %2457 = vmatmul.mubr.msk.bf16.gmra.mrb[20].mxu1 %vm1871_vm4, %v1811_v33  ;;  %v1479_v5 = vpop.permute.xlu0 %1478 }
 0x304   : > { %v1391_v37 = vpop.permute.xlu1 %1390 }
 0x305   : > { %v1643_v34 = vsel %vm805_vm5, %v3171_v54, %v1391_v37 }
 0x306   : > { %v1667_v35 = vsel %vm867_vm7, %v1643_v34, %v1453_v56 }
 0x307   : > { %v1617_v36 = vpop.permute.xlu0 %1616  ;;  %v1691_v53 = vsel %vm929_vm9, %v1667_v35, %v1477_v63 }
 0x308   : > { %v1560_v44 = vpop.permute.xlu1 %1559 }
 0x30b   : > { %v1455_v6 = vpop.permute.xlu0 %1454 }
 0x30c   : > { %v1536_v24 = vpop.permute.xlu1 %1535 }
 0x30f   : > { %v1590_v14 = vpop.permute.xlu0 %1589 }
 0x310   : > { %v1788_v49 = vsel %vm1778_vm2, %v1763_v43, %v1590_v14  ;;  %v1509_v11 = vpop.permute.xlu1 %1508 }
 0x311   : > { %v1813_v47 = vsel %vm1803_vm3, %v1788_v49, %v1617_v36  ;;  %v1715_v8 = vsel %vm991_vm11, %v1691_v53, %v1509_v11 }
 0x312   : > { %2460 = vmatprep.mubr.msk.bf16.mxu1 %vm1871_vm4, %v1813_v47  ;;  %v1740_v1 = vsel %vm1728_vm14, %v1715_v8, %v1536_v24 }
 0x313   : > { %v1562_v51 = vpop.permute.xlu0 %1561  ;;  %v1765_v57 = vsel %vm1753_vm15, %v1740_v1, %v1560_v44 }
 0x314   : > { %v1393_v52 = vpop.permute.xlu1 %1392 }
 0x315   : > { %v1645_v13 = vsel %vm805_vm5, %v3175_v41, %v1393_v52 }
 0x316   : > { %v1669_v15 = vsel %vm867_vm7, %v1645_v13, %v1455_v6 }
 0x317   : > { %v1619_v9 = vpop.permute.xlu0 %1618  ;;  %v1693_v18 = vsel %vm929_vm9, %v1669_v15, %v1479_v5 }
 0x318   : > { %v1481_v60 = vpop.permute.xlu1 %1480 }
 0x31b   : > { %v1538_v29 = vpop.permute.xlu0 %1537 }
 0x31c   : > { %v1457_v2 = vpop.permute.xlu1 %1456 }
 0x31f   : > { %v1511_v10 = vpop.permute.xlu0 %1510 }
 0x320   : > { %v1592_v50 = vpop.permute.xlu1 %1591  ;;  %v1717_v7 = vsel %vm991_vm11, %v1693_v18, %v1511_v10 }
 0x321   : > { %v1790_v54 = vsel %vm1778_vm2, %v1765_v57, %v1592_v50  ;;  %v1742_v63 = vsel %vm1728_vm14, %v1717_v7, %v1538_v29 }
 0x322   : > { %v1815_v42 = vsel %vm1803_vm3, %v1790_v54, %v1619_v9  ;;  %v1767_v41 = vsel %vm1753_vm15, %v1742_v63, %v1562_v51 }
 0x323   : > { %2461 = vmatmul.mubr.msk.bf16.gmra.mrb[24].mxu1 %vm1871_vm4, %v1815_v42  ;;  %v1483_v59 = vpop.permute.xlu0 %1482 }
 0x324   : > { %v1395_v16 = vpop.permute.xlu1 %1394 }
 0x325   : > { %v1647_v4 = vsel %vm805_vm5, %v3179_v12, %v1395_v16 }
 0x326   : > { %v1671_v33 = vsel %vm867_vm7, %v1647_v4, %v1457_v2 }
 0x327   : > { %v1621_v40 = vpop.permute.xlu0 %1620  ;;  %v1695_v38 = vsel %vm929_vm9, %v1671_v33, %v1481_v60 }
 0x328   : > { %v1564_v19 = vpop.permute.xlu1 %1563 }
 0x32b   : > { %v1459_v46 = vpop.permute.xlu0 %1458 }
 0x32c   : > { %v1540_v23 = vpop.permute.xlu1 %1539 }
 0x32f   : > { %v1594_v58 = vpop.permute.xlu0 %1593 }
 0x330   : > { %v1792_v26 = vsel %vm1778_vm2, %v1767_v41, %v1594_v58  ;;  %v1513_v56 = vpop.permute.xlu1 %1512 }
 0x331   : > { %v1817_v27 = vsel %vm1803_vm3, %v1792_v26, %v1621_v40  ;;  %v1719_v36 = vsel %vm991_vm11, %v1695_v38, %v1513_v56 }
 0x332   : > { %2464 = vmatprep.mubr.msk.bf16.mxu1 %vm1871_vm4, %v1817_v27  ;;  %v1744_v45 = vsel %vm1728_vm14, %v1719_v36, %v1540_v23 }
 0x333   : > { %v1566_v39 = vpop.permute.xlu0 %1565  ;;  %v1769_v24 = vsel %vm1753_vm15, %v1744_v45, %v1564_v19 }
 0x334   : > { %v1397_v55 = vpop.permute.xlu1 %1396 }
 0x335   : > { %v1649_v6 = vsel %vm805_vm5, %v3183_v22, %v1397_v55 }
 0x336   : > { %v1673_v12 = vsel %vm867_vm7, %v1649_v6, %v1459_v46 }
 0x337   : > { %v1623_v21 = vpop.permute.xlu0 %1622  ;;  %v1697_v11 = vsel %vm929_vm9, %v1673_v12, %v1483_v59 }
 0x338   : > { %v1485_v30 = vpop.permute.xlu1 %1484 }
 0x33b   : > { %v1542_v5 = vpop.permute.xlu0 %1541 }
 0x33c   : > { %v1461_v37 = vpop.permute.xlu1 %1460 }
 0x33f   : > { %v1625_v28 = vpop.permute.xlu0 %1624 }
 0x340   : > { %v1544_v44 = vpop.permute.xlu1 %1543 }
 0x343   : > { %v1463_v20 = vpop.permute.xlu0 %1462 }
 0x344   : > { %v1596_v43 = vpop.permute.xlu1 %1595 }
 0x345   : > { %v1794_v14 = vsel %vm1778_vm2, %v1769_v24, %v1596_v43 }
 0x346   : > { %v1819_v49 = vsel %vm1803_vm3, %v1794_v14, %v1623_v21 }
 0x347   : > { %2465 = vmatmul.mubr.msk.bf16.gmra.mrb[28].mxu1 %vm1871_vm4, %v1819_v49  ;;  %v1515_v47 = vpop.permute.xlu0 %1514 }
 0x348   : > { %v1721_v34 = vsel %vm991_vm11, %v1697_v11, %v1515_v47  ;;  %v1399_v51 = vpop.permute.xlu1 %1398 }
 0x349   : > { %v1746_v22 = vsel %vm1728_vm14, %v1721_v34, %v1542_v5  ;;  %v1651_v52 = vsel %vm805_vm5, %v3187_v32, %v1399_v51 }
 0x34a   : > { %v1675_v35 = vsel %vm867_vm7, %v1651_v52, %v1461_v37  ;;  %v1771_v9 = vsel %vm1753_vm15, %v1746_v22, %v1566_v39 }
 0x34b   : > { %v1598_v60 = vpop.permute.xlu0 %1597  ;;  %v1699_v53 = vsel %vm929_vm9, %v1675_v35, %v1485_v30 }
 0x34c   : > { %v1796_v8 = vsel %vm1778_vm2, %v1771_v9, %v1598_v60  ;;  %v1517_v29 = vpop.permute.xlu1 %1516 }
 0x34d   : > { %v1723_v2 = vsel %vm991_vm11, %v1699_v53, %v1517_v29  ;;  %v1821_v1 = vsel %vm1803_vm3, %v1796_v8, %v1625_v28 }
 0x34e   : > { %v1748_v10 = vsel %vm1728_vm14, %v1723_v2, %v1544_v44  ;;  %2468 = vmatprep.mubr.msk.bf16.mxu1 %vm1871_vm4, %v1821_v1 }
 0x34f   : > { %v1773_v32 = vsel %vm1753_vm15, %v1748_v10, %v3371_v48  ;;  %v1570_v57 = vpop.permute.xlu0 %1569 }
 0x350   : > { %v1572_v50 = vpop.permute.xlu1 %1571  ;;  %v1798_v54 = vsel %vm1778_vm2, %v1773_v32, %v3389_v25 }
 0x351   : > { %v1823_v13 = vsel %vm1803_vm3, %v1798_v54, %v3382_v17  ;;  %v1777_v19 = vsel %vm1753_vm15, %v3432_v62, %v1572_v50 }
 0x352   : > { %2469 = vmatmul.mubr.msk.bf16.gmra.mrb[32].mxu1 %vm1871_vm4, %v1823_v13 }
 0x353   : > { %v1602_v59 = vpop.permute.xlu0 %1601 }
 0x354   : > { %v1401_v42 = vpop.permute.xlu1 %1400 }
 0x355   : > { %v1653_v16 = vsel %vm805_vm5, %v3207_v3, %v1401_v42 }
 0x356   : > { %v1677_v15 = vsel %vm867_vm7, %v1653_v16, %v1463_v20 }
 0x357   : > { %v1701_v48 = vsel %vm929_vm9, %v1677_v15, %v3361_v61  ;;  %v1629_v7 = vpop.permute.xlu0 %1628 }
 0x358   : > { %v1725_v40 = vsel %vm991_vm11, %v1701_v48, %v3401_v31  ;;  %v1604_v25 = vpop.permute.xlu1 %1603 }
 0x359   : > { %v1750_v17 = vsel %vm1728_vm14, %v1725_v40, %v3387_v0  ;;  %v1802_v63 = vsel %vm1778_vm2, %v1777_v19, %v1604_v25  ;;  %v3590_v0 = vld [vmem:[%s3653_s4] ss:$0 sm:$0xff] }
 0x35a   : > { %v1775_v18 = vsel %vm1753_vm15, %v1750_v17, %v1570_v57 }
 0x35b   : > { %v1800_v3 = vsel %vm1778_vm2, %v1775_v18, %v1602_v59 }
 0x35c   : > { %v1825_v46 = vsel %vm1803_vm3, %v1800_v3, %v1629_v7  ;;  %v1631_v61 = vpop.permute.xlu1 %1630 }
 0x35d   : > { %v1827_v23 = vsel %vm1803_vm3, %v1802_v63, %v1631_v61  ;;  %2472 = vmatprep.mubr.msk.bf16.mxu1 %vm1871_vm4, %v1825_v46 }
 0x35e   : > { %2473 = vmatmul.mubr.msk.bf16.gmra.mrb[36].mxu1 %vm1871_vm4, %v1827_v23 }
 0x3b6   : > { %v2454_v31 = vpop.f32.mrb[16].mxu1 }
 0x3b7   : > { %v1943_v62 = vadd.f32 %v2454_v31, %v3590_v0  ;;  %v1934_v41 = vpop.f32.mrb[17].mxu1 }
 0x3b8   : > { %v1935_v58 = vadd.f32 %v3590_v0, %v1934_v41  ;;  %v2455_v26 = vpop.f32.mrb[18].mxu1 }
 0x3b9   : > { %v2031_v56 = vmax.f32 %v1943_v62, 0.0  ;;  %v1946_v27 = vadd.f32 %v2455_v26, %v3590_v0  ;;  %v1937_v39 = vpop.f32.mrb[19].mxu1 }
 0x3ba   : > { %v2029_v55 = vmax.f32 %v1935_v58, 0.0  ;;  %v1938_v4 = vadd.f32 %v3590_v0, %v1937_v39 }
 0x3bb   : > { %v2319_v21 = vpack.c.bf16 %v2031_v56, %v2031_v56  ;;  %v2032_v30 = vmax.f32 %v1946_v27, 0.0 }
 0x3bc   : > { %v2317_v33 = vpack.c.bf16 %v2029_v55, %v2029_v55  ;;  %v2030_v5 = vmax.f32 %v1938_v4, 0.0 }
 0x3bd   : > { %2151 = vst [vmem:[%s3599_s11 + $0x8] sm:$0xf] %v2319_v21  ;;  %v2320_v37 = vpack.c.bf16 %v2032_v30, %v2032_v30 }
 0x3be   : > { %2149 = vst [vmem:[%s3599_s11] sm:$0xf] %v2317_v33  ;;  %v2318_v38 = vpack.c.bf16 %v2030_v5, %v2030_v5 }
 0x3bf   : > { %2152 = vst [vmem:[%s3599_s11 + $0xc] sm:$0x3] %v2320_v37 }
 0x3c0   : > { %2150 = vst [vmem:[%s3599_s11 + $0x4] sm:$0x3] %v2318_v38 }
 0x3d6   : > { %v2458_v36 = vpop.f32.mrb[20].mxu1 }
 0x3d7   : > { %v1959_v28 = vadd.f32 %v2458_v36, %v3590_v0  ;;  %v1950_v44 = vpop.f32.mrb[21].mxu1 }
 0x3d8   : > { %v1951_v45 = vadd.f32 %v3590_v0, %v1950_v44  ;;  %v2459_v6 = vpop.f32.mrb[22].mxu1 }
 0x3d9   : > { %v2035_v20 = vmax.f32 %v1959_v28, 0.0  ;;  %v1962_v12 = vadd.f32 %v2459_v6, %v3590_v0  ;;  %v1953_v24 = vpop.f32.mrb[23].mxu1 }
 0x3da   : > { %v2033_v43 = vmax.f32 %v1951_v45, 0.0  ;;  %v1954_v14 = vadd.f32 %v3590_v0, %v1953_v24 }
 0x3db   : > { %v2323_v49 = vpack.c.bf16 %v2035_v20, %v2035_v20  ;;  %v2036_v11 = vmax.f32 %v1962_v12, 0.0 }
 0x3dc   : > { %v2321_v47 = vpack.c.bf16 %v2033_v43, %v2033_v43  ;;  %v2034_v34 = vmax.f32 %v1954_v14, 0.0 }
 0x3dd   : > { %2155 = vst [vmem:[%s3599_s11 + $0x18] sm:$0xf] %v2323_v49  ;;  %v2324_v51 = vpack.c.bf16 %v2036_v11, %v2036_v11 }
 0x3de   : > { %2153 = vst [vmem:[%s3599_s11 + $0x10] sm:$0xf] %v2321_v47  ;;  %v2322_v22 = vpack.c.bf16 %v2034_v34, %v2034_v34 }
 0x3df   : > { %2156 = vst [vmem:[%s3599_s11 + $0x1c] sm:$0x3] %v2324_v51 }
 0x3e0   : > { %2154 = vst [vmem:[%s3599_s11 + $0x14] sm:$0x3] %v2322_v22 }
 0x3f6   : > { %v2462_v52 = vpop.f32.mrb[24].mxu1 }
 0x3f7   : > { %v1975_v35 = vadd.f32 %v2462_v52, %v3590_v0  ;;  %v1966_v9 = vpop.f32.mrb[25].mxu1 }
 0x3f8   : > { %v1967_v60 = vadd.f32 %v3590_v0, %v1966_v9  ;;  %v2463_v53 = vpop.f32.mrb[26].mxu1 }
 0x3f9   : > { %v2039_v8 = vmax.f32 %v1975_v35, 0.0  ;;  %v1978_v29 = vadd.f32 %v2463_v53, %v3590_v0  ;;  %v1969_v2 = vpop.f32.mrb[27].mxu1 }
 0x3fa   : > { %v2037_v1 = vmax.f32 %v1967_v60, 0.0  ;;  %v1970_v10 = vadd.f32 %v3590_v0, %v1969_v2 }
 0x3fb   : > { %v2327_v32 = vpack.c.bf16 %v2039_v8, %v2039_v8  ;;  %v2040_v57 = vmax.f32 %v1978_v29, 0.0 }
 0x3fc   : > { %v2325_v50 = vpack.c.bf16 %v2037_v1, %v2037_v1  ;;  %v2038_v54 = vmax.f32 %v1970_v10, 0.0 }
 0x3fd   : > { %2159 = vst [vmem:[%s3599_s11 + $0x28] sm:$0xf] %v2327_v32  ;;  %v2328_v13 = vpack.c.bf16 %v2040_v57, %v2040_v57 }
 0x3fe   : > { %2157 = vst [vmem:[%s3599_s11 + $0x20] sm:$0xf] %v2325_v50  ;;  %v2326_v42 = vpack.c.bf16 %v2038_v54, %v2038_v54 }
 0x3ff   : > { %2160 = vst [vmem:[%s3599_s11 + $0x2c] sm:$0x3] %v2328_v13 }
 0x400   : > { %2158 = vst [vmem:[%s3599_s11 + $0x24] sm:$0x3] %v2326_v42 }
 0x41a   : > { %v2466_v59 = vpop.f32.mrb[28].mxu1 }
 0x41b   : > { %v1991_v16 = vadd.f32 %v2466_v59, %v3590_v0  ;;  %v1982_v15 = vpop.f32.mrb[29].mxu1 }
 0x41c   : > { %v1983_v48 = vadd.f32 %v3590_v0, %v1982_v15  ;;  %v2467_v40 = vpop.f32.mrb[30].mxu1 }
 0x41d   : > { %v2043_v25 = vmax.f32 %v1991_v16, 0.0  ;;  %v1994_v17 = vadd.f32 %v2467_v40, %v3590_v0  ;;  %v1985_v18 = vpop.f32.mrb[31].mxu1 }
 0x41e   : > { %v2041_v19 = vmax.f32 %v1983_v48, 0.0  ;;  %v1986_v3 = vadd.f32 %v3590_v0, %v1985_v18 }
 0x41f   : > { %v2331_v7 = vpack.c.bf16 %v2043_v25, %v2043_v25  ;;  %v2044_v46 = vmax.f32 %v1994_v17, 0.0 }
 0x420   : > { %v2329_v63 = vpack.c.bf16 %v2041_v19, %v2041_v19  ;;  %v2042_v61 = vmax.f32 %v1986_v3, 0.0 }
 0x421   : > { %2163 = vst [vmem:[%s3599_s11 + $0x38] sm:$0xf] %v2331_v7  ;;  %v2332_v23 = vpack.c.bf16 %v2044_v46, %v2044_v46 }
 0x422   : > { %2161 = vst [vmem:[%s3599_s11 + $0x30] sm:$0xf] %v2329_v63  ;;  %v2330_v31 = vpack.c.bf16 %v2042_v61, %v2042_v61 }
 0x423   : > { %2164 = vst [vmem:[%s3599_s11 + $0x3c] sm:$0x3] %v2332_v23 }
 0x424   : > { %2162 = vst [vmem:[%s3599_s11 + $0x34] sm:$0x3] %v2330_v31 }
 0x425   : > { %v2470_v62 = vpop.f32.mrb[32].mxu1 }
 0x426   : > { %v2007_v41 = vadd.f32 %v2470_v62, %v3590_v0  ;;  %v1998_v58 = vpop.f32.mrb[33].mxu1 }
 0x427   : > { %v1999_v26 = vadd.f32 %v3590_v0, %v1998_v58  ;;  %v2471_v56 = vpop.f32.mrb[34].mxu1 }
 0x428   : > { %v2047_v27 = vmax.f32 %v2007_v41, 0.0  ;;  %v2010_v39 = vadd.f32 %v2471_v56, %v3590_v0  ;;  %v2001_v55 = vpop.f32.mrb[35].mxu1 }
 0x429   : > { %v2045_v4 = vmax.f32 %v1999_v26, 0.0  ;;  %v2002_v21 = vadd.f32 %v3590_v0, %v2001_v55 }
 0x42a   : > { %v2335_v30 = vpack.c.bf16 %v2047_v27, %v2047_v27  ;;  %v2048_v33 = vmax.f32 %v2010_v39, 0.0 }
 0x42b   : > { %v2333_v5 = vpack.c.bf16 %v2045_v4, %v2045_v4  ;;  %v2046_v37 = vmax.f32 %v2002_v21, 0.0 }
 0x42c   : > { %2167 = vst [vmem:[%s3599_s11 + $0x48] sm:$0xf] %v2335_v30  ;;  %v2336_v38 = vpack.c.bf16 %v2048_v33, %v2048_v33 }
 0x42d   : > { %2165 = vst [vmem:[%s3599_s11 + $0x40] sm:$0xf] %v2333_v5  ;;  %v2334_v36 = vpack.c.bf16 %v2046_v37, %v2046_v37 }
 0x42e   : > { %2168 = vst [vmem:[%s3599_s11 + $0x4c] sm:$0x3] %v2336_v38 }
 0x42f   : > { %2166 = vst [vmem:[%s3599_s11 + $0x44] sm:$0x3] %v2334_v36 }
 0x431   : > { %v2474_v28 = vpop.f32.mrb[36].mxu1 }
 0x432   : > { %v2023_v44 = vadd.f32 %v2474_v28, %v3590_v0  ;;  %v2014_v45 = vpop.f32.mrb[37].mxu1 }
 0x433   : > { %v2015_v6 = vadd.f32 %v3590_v0, %v2014_v45  ;;  %v2475_v20 = vpop.f32.mrb[38].mxu1 }
 0x434   : > { %v2051_v12 = vmax.f32 %v2023_v44, 0.0  ;;  %v2026_v24 = vadd.f32 %v2475_v20, %v3590_v0  ;;  %v2017_v43 = vpop.f32.mrb[39].mxu1 }
 0x435   : > { %v2049_v14 = vmax.f32 %v2015_v6, 0.0  ;;  %v2018_v49 = vadd.f32 %v3590_v0, %v2017_v43 }
 0x436   : > { %v2339_v11 = vpack.c.bf16 %v2051_v12, %v2051_v12  ;;  %v2052_v47 = vmax.f32 %v2026_v24, 0.0 }
 0x437   : > { %v2337_v34 = vpack.c.bf16 %v2049_v14, %v2049_v14  ;;  %v2050_v51 = vmax.f32 %v2018_v49, 0.0 }
 0x438   : > { %2171 = vst [vmem:[%s3599_s11 + $0x58] sm:$0xf] %v2339_v11  ;;  %v2340_v22 = vpack.c.bf16 %v2052_v47, %v2052_v47 }
 0x439   : > { %2169 = vst [vmem:[%s3599_s11 + $0x50] sm:$0xf] %v2337_v34  ;;  %v2338_v52 = vpack.c.bf16 %v2050_v51, %v2050_v51 }
 0x43a   : > { %2172 = vst [vmem:[%s3599_s11 + $0x5c] sm:$0x3] %v2340_v22 }
 0x43b   : > { %2170 = vst [vmem:[%s3599_s11 + $0x54] sm:$0x3] %v2338_v52 }
 0x43c PF: > { %s15_s18 = sadd.s32 1, %s2540_s18  }
 0x43d   : > { %p12_p4 = scmp.ge.s32.totalorder %s15_s18, 4  }
 0x43f   :  { %14 = sbr.rel (!%p12_p4) target bundleno = 1 (0x1), region = 70 }

</bundles_post_ra>
